<compile_context>
chip_gen: v7x
topology: tpu7x:2x2x1
jax: 0.10.0
libtpu: 0.0.40
codegen_flags: <defaults>
</compile_context>

<pallas_src>
import functools

import jax
import jax.numpy as jnp
import numpy as np
from jax import lax
from jax.experimental import pallas as pl
from jax.experimental.pallas import tpu as pltpu


class _VMEMBudgetError(ValueError):
    pass


def _round_up(x, m):
    return (x + m - 1) // m * m


def _cdiv(a, b):
    return (a + b - 1) // b


def _device_kind():
    try:
        return jax.devices()[0].device_kind.lower()
    except Exception:
        return ""


def _vmem_capacity_bytes():
    try:
        cap = int(pltpu.get_tpu_info().vmem_capacity_bytes)
        if cap > 0:
            return cap
    except Exception:
        pass
    kind = _device_kind()
    if "v5" in kind or "v6" in kind:
        return 128 * 1024 * 1024
    # v7x has 64 MiB per TensorCore; also a safe generic floor.
    return 64 * 1024 * 1024


def _default_precision():
    kind = _device_kind()
    # v5e: HIGHEST f32 is a multi-pass bf16 emulation that can flip the kernel
    # from HBM-bound to MXU-bound; default to DEFAULT there (override if you
    # need tighter numerics).  v6e/v7x hide the extra passes under DMA.
    if "v5 lite" in kind or "v5e" in kind or "v5lite" in kind:
        return lax.Precision.DEFAULT
    return lax.Precision.HIGHEST


def _lora_kernel(x_ref, wd_ref, wu_ref, o_ref, *, scale, compute_dtype,
                 precision):
    # x_ref:  (TM, in_features)      input rows, original dtype
    # wd_ref: (rank_p, in_features)  down-projection weight (zero-padded rank)
    # wu_ref: (out_features, rank_p) up-projection weight  (zero-padded rank)
    # o_ref:  (TM, out_features)     output rows, original dtype
    x = x_ref[...].astype(compute_dtype)

    # (TM, in) x (rank_p, in) -> (TM, rank_p): contract last dims of both
    # operands (transposed-RHS MXU form; no explicit transpose / relayout).
    down = lax.dot_general(
        x, wd_ref[...],
        dimension_numbers=(((1,), (1,)), ((), ())),
        preferred_element_type=jnp.float32,
        precision=precision)

    # (TM, rank_p) x (out, rank_p) -> (TM, out). Round `down` at the compute
    # dtype first (the first Linear's output is in the weight dtype).
    up = lax.dot_general(
        down.astype(compute_dtype), wu_ref[...],
        dimension_numbers=(((1,), (1,)), ((), ())),
        preferred_element_type=jnp.float32,
        precision=precision)

    # Match PyTorch ordering: round the second Linear's output to the weight
    # dtype, apply the alpha/rank scale there, then cast to the input dtype.
    up = up.astype(compute_dtype)
    if scale is not None:
        up = up * jnp.asarray(scale, dtype=compute_dtype)
    o_ref[...] = up.astype(o_ref.dtype)


def lora_linear_forward(hidden_states, w_down, w_up, network_alpha=None, *,
                        tm_max=1024, precision=None, vmem_limit_bytes=None):
    """LoRA linear forward. hidden_states: (..., in_features)."""
    orig_dtype = hidden_states.dtype
    compute_dtype = w_down.dtype          # dtype of self.down.weight
    rank, in_features = w_down.shape
    out_features, rank_u = w_up.shape
    assert rank_u == rank, "w_up must be (out_features, rank)"

    if precision is None:
        precision = _default_precision()
    if vmem_limit_bytes is None:
        vmem_limit_bytes = int(_vmem_capacity_bytes() * 3 // 4)

    lead_shape = hidden_states.shape[:-1]
    n_rows = int(np.prod(lead_shape)) if lead_shape else 1
    x2d = hidden_states.reshape(n_rows, in_features)

    scale = None
    if network_alpha is not None:
        scale = float(network_alpha) / float(rank)   # original rank, pre-pad

    # --- Zero-pad rank to a multiple of 128: lane-dense `down` intermediate,
    # MXU-aligned contraction for the up matmul.  Zero rows/cols add exact 0.
    rank_p = _round_up(rank, 128)
    if rank_p != rank:
        w_down = jnp.pad(w_down, ((0, rank_p - rank), (0, 0)))
        w_up = jnp.pad(w_up, ((0, 0), (0, rank_p - rank)))

    io_bytes = jnp.dtype(orig_dtype).itemsize
    cmp_bytes = jnp.dtype(compute_dtype).itemsize
    # Packed sublane tile of the I/O dtype: 8 rows for f32, 16 bf16, 32 int8.
    row_align = max(8, 32 // io_bytes)

    # --- VMEM accounting (per row of a tile): double-buffered x/out tiles plus
    # in-kernel intermediates (upcast x, f32 down/up + compute-dtype copies).
    per_row_bytes = (
        2 * (in_features + out_features) * io_bytes
        + (in_features * cmp_bytes if orig_dtype != compute_dtype else 0)
        + rank_p * (4 + cmp_bytes)
        + out_features * (4 + cmp_bytes)
    )
    weight_bytes = (rank_p * in_features + out_features * rank_p) * cmp_bytes
    headroom = 2 * 1024 * 1024

    def run(single_buffer_weights):
        weight_buffers = 1 if single_buffer_weights else 2
        budget = vmem_limit_bytes - weight_buffers * weight_bytes - headroom
        if budget < row_align * per_row_bytes:
            raise _VMEMBudgetError(
                f"LoRA weights ({weight_buffers}x{weight_bytes} B) plus a "
                f"minimal {row_align}-row tile ({row_align * per_row_bytes} B) "
                f"exceed the VMEM limit ({vmem_limit_bytes} B).")

        tm = min(tm_max, budget // per_row_bytes)
        tm = max(row_align, tm // row_align * row_align)
        # Keep multiple grid steps (up to 8) when there are enough rows: gives
        # the BlockSpec pipeline steps to overlap and lets v7x's two
        # TensorCores share the "parallel" row axis.
        steps_target = min(8, max(1, n_rows // row_align))
        if steps_target > 1:
            tm = min(tm, _round_up(_cdiv(n_rows, steps_target), row_align))
        if tm >= n_rows:
            tm = n_rows          # single full block (full-dim block is legal)
        grid = (_cdiv(n_rows, tm),)

        w_spec_kwargs = (
            {"pipeline_mode": pl.Buffered(1)} if single_buffer_weights else {})
        in_specs = [
            # Streamed activations: one row tile per grid step; ragged last
            # block handled by Pallas (padded reads / masked writes).
            pl.BlockSpec((tm, in_features), lambda i: (i, 0)),
            # Weights: constant block index -> VMEM-resident across the grid.
            pl.BlockSpec((rank_p, in_features), lambda i: (0, 0),
                         **w_spec_kwargs),
            pl.BlockSpec((out_features, rank_p), lambda i: (0, 0),
                         **w_spec_kwargs),
        ]
        return pl.pallas_call(
            functools.partial(_lora_kernel, scale=scale,
                              compute_dtype=compute_dtype,
                              precision=precision),
            out_shape=jax.ShapeDtypeStruct((n_rows, out_features), orig_dtype),
            grid_spec=pltpu.PrefetchScalarGridSpec(
                num_scalar_prefetch=0,
                grid=grid,
                in_specs=in_specs,
                out_specs=pl.BlockSpec((tm, out_features), lambda i: (i, 0)),
            ),
            compiler_params=pltpu.CompilerParams(
                dimension_semantics=("parallel",),
                vmem_limit_bytes=vmem_limit_bytes,
            ),
        )(x2d, w_down, w_up)

    try:
        out2d = run(single_buffer_weights=True)
    except _VMEMBudgetError:
        raise
    except Exception:
        # pipeline_mode=pl.Buffered(1) unsupported on this jax build: fall back
        # to default double-buffered weights (costs VMEM only, same numerics).
        out2d = run(single_buffer_weights=False)

    return out2d.reshape(*lead_shape, out_features)


def init_lora_params(key, in_features, out_features, rank, dtype=jnp.float32):
    """Deterministic init matching the PyTorch module __init__."""
    w_down = (jax.random.normal(key, (rank, in_features), jnp.float32)
              * (1.0 / rank)).astype(dtype)        # Normal(0, std=1/rank)
    w_up = jnp.zeros((out_features, rank), dtype=dtype)   # zeros
    return w_down, w_up


if __name__ == "__main__":
    key = jax.random.PRNGKey(0)
    k_x, k_d, k_u, k_x2 = jax.random.split(key, 4)

    batch, seq = 2, 8
    in_features, out_features, rank = 32, 32, 4
    network_alpha = 8.0

    # Non-zero weights so the numerical check is non-trivial (the module's own
    # init zeros W_up, which would make any output trivially "correct").
    w_down = (jax.random.normal(k_d, (rank, in_features), jnp.float32)
              * (1.0 / rank))
    w_up = jax.random.normal(k_u, (out_features, rank), jnp.float32) * 0.1

    def ref_np(x, wd, wu, alpha):
        x64 = np.asarray(x, np.float64)
        out = x64 @ np.asarray(wd, np.float64).T @ np.asarray(wu, np.float64).T
        if alpha is not None:
            out = out * (float(alpha) / wd.shape[0])
        return out

    # Tests use HIGHEST precision explicitly so tolerances hold on every
    # TPU generation (the wrapper default relaxes precision on v5e).
    HI = lax.Precision.HIGHEST
    ok = True

    # 1) Basic f32 case (grid split into multiple row tiles).
    x1 = jax.random.normal(k_x, (batch, seq, in_features), jnp.float32)
    out1 = jax.block_until_ready(
        lora_linear_forward(x1, w_down, w_up, network_alpha, precision=HI))
    ok &= out1.shape == (batch, seq, out_features)
    ok &= out1.dtype == jnp.float32
    ok &= bool(np.allclose(np.asarray(out1),
                           ref_np(x1, w_down, w_up, network_alpha),
                           atol=1e-4, rtol=1e-4))

    # 2) Non-divisible row count (ragged last block: padded read/masked write).
    x2 = jax.random.normal(k_x2, (3, 5, in_features), jnp.float32)
    out2 = jax.block_until_ready(
        lora_linear_forward(x2, w_down, w_up, network_alpha,
                            tm_max=8, precision=HI))
    ok &= out2.shape == (3, 5, out_features)
    ok &= bool(np.allclose(np.asarray(out2),
                           ref_np(x2, w_down, w_up, network_alpha),
                           atol=1e-4, rtol=1e-4))

    # 3) bf16 activations with f32 weights (exercises in-kernel up/downcast).
    x3 = x1.astype(jnp.bfloat16)
    out3 = jax.block_until_ready(
        lora_linear_forward(x3, w_down, w_up, network_alpha, precision=HI))
    ok &= out3.dtype == jnp.bfloat16
    ok &= bool(np.allclose(np.asarray(out3.astype(jnp.float32)),
                           ref_np(np.asarray(x3.astype(jnp.float32)),
                                  w_down, w_up, network_alpha),
                           atol=2e-2, rtol=2e-2))

    if not ok:
        raise SystemExit("MISMATCH")
    print("KERNEL_OK")
</pallas_src>

<mosaic_0001>
module attributes {stable_mosaic.version = 11 : i64} {
  func.func @_lora_kernel(%arg0: i32, %arg1: memref<8x32xf32, #tpu.memory_space<vmem>>, %arg2: memref<128x32xf32, #tpu.memory_space<vmem>>, %arg3: memref<32x128xf32, #tpu.memory_space<vmem>>, %arg4: memref<8x32xf32, #tpu.memory_space<vmem>>) attributes {dimension_semantics = [#tpu.dimension_semantics<parallel>], iteration_bounds = array<i64: 2>, scalar_prefetch = 0 : i64, scratch_operands = 0 : i64, tpu.core_type = #tpu.core_type<tc>, window_params = [{transform_indices = @transform_0, window_bounds = array<i64: 8, 32>}, {pipeline_mode = #tpu.pipeline_mode<synchronous>, transform_indices = @transform_1, window_bounds = array<i64: 128, 32>}, {pipeline_mode = #tpu.pipeline_mode<synchronous>, transform_indices = @transform_2, window_bounds = array<i64: 32, 128>}, {transform_indices = @transform_3, window_bounds = array<i64: 8, 32>}]} {
    %c0 = arith.constant 0 : index
    %c0_0 = arith.constant 0 : index
    %0 = vector.load %arg1[%c0, %c0_0] : memref<8x32xf32, #tpu.memory_space<vmem>>, vector<8x32xf32>
    %c0_1 = arith.constant 0 : index
    %c0_2 = arith.constant 0 : index
    %1 = vector.load %arg2[%c0_1, %c0_2] : memref<128x32xf32, #tpu.memory_space<vmem>>, vector<128x32xf32>
    %cst = arith.constant dense<0.000000e+00> : vector<8x128xf32>
    %2 = tpu.matmul %0, %1, %cst {dimension_numbers = #tpu.dot_dimension_numbers<[1], [1], [0], [0], [0, 0, 1, 0], [], []>, precision = #tpu.contract_precision<fp32>} : vector<8x32xf32>, vector<128x32xf32>, vector<8x128xf32> -> vector<8x128xf32>
    %c0_3 = arith.constant 0 : index
    %c0_4 = arith.constant 0 : index
    %3 = vector.load %arg3[%c0_3, %c0_4] : memref<32x128xf32, #tpu.memory_space<vmem>>, vector<32x128xf32>
    %cst_5 = arith.constant dense<0.000000e+00> : vector<8x32xf32>
    %4 = tpu.matmul %2, %3, %cst_5 {dimension_numbers = #tpu.dot_dimension_numbers<[1], [1], [0], [0], [0, 0, 1, 0], [], []>, precision = #tpu.contract_precision<fp32>} : vector<8x128xf32>, vector<32x128xf32>, vector<8x32xf32> -> vector<8x32xf32>
    %cst_6 = arith.constant 2.000000e+00 : f32
    %5 = vector.broadcast %cst_6 : f32 to vector<8x32xf32>
    %6 = arith.mulf %4, %5 : vector<8x32xf32>
    %c0_7 = arith.constant 0 : index
    %c0_8 = arith.constant 0 : index
    %7 = vector.load %arg4[%c0_7, %c0_8] : memref<8x32xf32, #tpu.memory_space<vmem>>, vector<8x32xf32>
    tpu.vector_store %arg4[%c0_7, %c0_8], %6 {strides = array<i32>} : memref<8x32xf32, #tpu.memory_space<vmem>>, vector<8x32xf32>,
    return
  }
  func.func @transform_0(%arg0: i32) -> (i32, i32) {
    %c0_i32 = arith.constant 0 : i32
    %c0_i32_0 = arith.constant 0 : i32
    return %arg0, %c0_i32 : i32, i32
  }
  func.func @transform_1(%arg0: i32) -> (i32, i32) {
    %c0_i32 = arith.constant 0 : i32
    %c0_i32_0 = arith.constant 0 : i32
    %c0_i32_1 = arith.constant 0 : i32
    return %c0_i32, %c0_i32_0 : i32, i32
  }
  func.func @transform_2(%arg0: i32) -> (i32, i32) {
    %c0_i32 = arith.constant 0 : i32
    %c0_i32_0 = arith.constant 0 : i32
    %c0_i32_1 = arith.constant 0 : i32
    return %c0_i32, %c0_i32_0 : i32, i32
  }
  func.func @transform_3(%arg0: i32) -> (i32, i32) {
    %c0_i32 = arith.constant 0 : i32
    %c0_i32_0 = arith.constant 0 : i32
    return %arg0, %c0_i32 : i32, i32
  }
}

module attributes {stable_mosaic.version = 11 : i64} {
  func.func @_lora_kernel(%arg0: i32, %arg1: memref<8x32xf32, #tpu.memory_space<vmem>>, %arg2: memref<128x32xf32, #tpu.memory_space<vmem>>, %arg3: memref<32x128xf32, #tpu.memory_space<vmem>>, %arg4: memref<8x32xf32, #tpu.memory_space<vmem>>) attributes {dimension_semantics = [#tpu.dimension_semantics<parallel>], iteration_bounds = array<i64: 2>, scalar_prefetch = 0 : i64, scratch_operands = 0 : i64, tpu.core_type = #tpu.core_type<tc>, window_params = [{transform_indices = @transform_0, window_bounds = array<i64: 8, 32>}, {pipeline_mode = #tpu.pipeline_mode<synchronous>, transform_indices = @transform_1, window_bounds = array<i64: 128, 32>}, {pipeline_mode = #tpu.pipeline_mode<synchronous>, transform_indices = @transform_2, window_bounds = array<i64: 32, 128>}, {transform_indices = @transform_3, window_bounds = array<i64: 8, 32>}]} {
    %c0 = arith.constant 0 : index
    %c0_0 = arith.constant 0 : index
    %0 = vector.load %arg1[%c0, %c0_0] : memref<8x32xf32, #tpu.memory_space<vmem>>, vector<8x32xf32>
    %c0_1 = arith.constant 0 : index
    %c0_2 = arith.constant 0 : index
    %1 = vector.load %arg2[%c0_1, %c0_2] : memref<128x32xf32, #tpu.memory_space<vmem>>, vector<128x32xf32>
    %cst = arith.constant dense<0.000000e+00> : vector<8x128xf32>
    %2 = tpu.matmul %0, %1, %cst {dimension_numbers = #tpu.dot_dimension_numbers<[1], [1], [0], [0], [0, 0, 1, 0], [], []>, precision = #tpu.contract_precision<fp32>} : vector<8x32xf32>, vector<128x32xf32>, vector<8x128xf32> -> vector<8x128xf32>
    %c0_3 = arith.constant 0 : index
    %c0_4 = arith.constant 0 : index
    %3 = vector.load %arg3[%c0_3, %c0_4] : memref<32x128xf32, #tpu.memory_space<vmem>>, vector<32x128xf32>
    %cst_5 = arith.constant dense<0.000000e+00> : vector<8x32xf32>
    %4 = tpu.matmul %2, %3, %cst_5 {dimension_numbers = #tpu.dot_dimension_numbers<[1], [1], [0], [0], [0, 0, 1, 0], [], []>, precision = #tpu.contract_precision<fp32>} : vector<8x128xf32>, vector<32x128xf32>, vector<8x32xf32> -> vector<8x32xf32>
    %cst_6 = arith.constant 2.000000e+00 : f32
    %5 = vector.broadcast %cst_6 : f32 to vector<8x32xf32>
    %6 = arith.mulf %4, %5 : vector<8x32xf32>
    %c0_7 = arith.constant 0 : index
    %c0_8 = arith.constant 0 : index
    %7 = vector.load %arg4[%c0_7, %c0_8] : memref<8x32xf32, #tpu.memory_space<vmem>>, vector<8x32xf32>
    tpu.vector_store %arg4[%c0_7, %c0_8], %6 {strides = array<i32>} : memref<8x32xf32, #tpu.memory_space<vmem>>, vector<8x32xf32>,
    return
  }
  func.func @transform_0(%arg0: i32) -> (i32, i32) {
    %c0_i32 = arith.constant 0 : i32
    %c0_i32_0 = arith.constant 0 : i32
    return %arg0, %c0_i32 : i32, i32
  }
  func.func @transform_1(%arg0: i32) -> (i32, i32) {
    %c0_i32 = arith.constant 0 : i32
    %c0_i32_0 = arith.constant 0 : i32
    %c0_i32_1 = arith.constant 0 : i32
    return %c0_i32, %c0_i32_0 : i32, i32
  }
  func.func @transform_2(%arg0: i32) -> (i32, i32) {
    %c0_i32 = arith.constant 0 : i32
    %c0_i32_0 = arith.constant 0 : i32
    %c0_i32_1 = arith.constant 0 : i32
    return %c0_i32, %c0_i32_0 : i32, i32
  }
  func.func @transform_3(%arg0: i32) -> (i32, i32) {
    %c0_i32 = arith.constant 0 : i32
    %c0_i32_0 = arith.constant 0 : i32
    return %arg0, %c0_i32 : i32, i32
  }
}

</mosaic_0001>

<bundles_post_ra>
// kernel: tpu_custom_call.1
= control target key start
LH: loop header
LB: loop body
LE: loop exit
PB: predicated region body
PF: predicated region fallthrough
CT: control target
= control target key end

     0   :  { %8 = vsyncpa [#allocation3], 0  ;;  %s2592_s0 = inlined_call_operand.vmem [shape: f32[16,32], index: 0, kind: input, shape index: {}]   ;;  %s2593_s1 = inlined_call_operand.vmem [shape: f32[128,32], index: 1, kind: input, shape index: {}]   ;;  %s2594_s2 = inlined_call_operand.vmem [shape: f32[32,128], index: 2, kind: input, shape index: {}]   ;;  %s2595_s3 = inlined_call_operand.hbm [shape: f32[16,32], index: 3, kind: output, shape index: {}]  }
   0x1   :  { %10 = vsyncpa [#allocation3 + $0x1], 0  ;;  %s2187_s12 = smov 0   ;;  %s2189_s13 = smov 0  }
   0x2   :  { %s2191_s14 = smov 0   ;;  %s2193_s15 = smov 0  }
   0x3 LB: > { %s2208_s16 = sadd.s32 4294967295, %s2161_s15   ;;  %s1440_s17 = sadd.s32 4294967294, %s2161_s15   ;;  %s2161_s15 = sphi %s2193_s15, %s2601_s15   ;;  %s2157_s14 = sphi %s2191_s14, %s2600_s14   ;;  %s2153_s13 = sphi %s2189_s13, %s2599_s13   ;;  %s2149_s12 = sphi %s2187_s12, %s2598_s12  }
   0x4   : > { %s2212_s18 = sadd.s32 1, %s2161_s15   ;;  %s91_s19 = sadd.s32 1, %s2157_s14 }
   0x5   : > { %s88_s20 = ssub.s32 %s2161_s15, %s2212_s18  ;;  %p101_p0 = scmp.ne.s32.totalorder %s2157_s14, %s2153_s13 }
   0x6   : > { %p89_p1 = scmp.eq.s32.totalorder %s88_s20, 0  ;;  %p102_p2 = scmp.eq.s32.totalorder %s2208_s16, 1 }
   0x7   : > { %p107_p3 = scmp.ne.s32.totalorder %s2153_s13, %s2149_s12  ;;  %p108_p4 = scmp.eq.s32.totalorder %s1440_s17, 1 }
   0x8   : > { %s2223_s21 = scalar_select %p89_p1, %s2157_s14, %s91_s19  }
   0x9   : > { %p2225_p5 = por %p102_p2, %p101_p0  ;;  %p2229_p6 = por %p108_p4, %p107_p3 }
   0xa   : > { %p1443_p7 = scmp.ge.s32.totalorder %s2161_s15, 1  ;;  %p139_p8 = scmp.lt.s32.totalorder %s2161_s15, 3 }
   0xc   : > { %p140_p9 = pnand %p1443_p7, %p139_p8 }
   0xd   : > { %v167_v0 = vld [vmem:[%s2593_s1] sm:$0xff] (!%p140_p9)  ;;  %v168_v1 = vld [vmem:[%s2593_s1 + $0x8] sm:$0xff] (!%p140_p9)  ;;  %vm183_vm0 = vcmask (!%p140_p9), 261120   ;;  %v169_v2 = vld [vmem:[%s2593_s1 + $0x10] sm:$0xff] (!%p140_p9)  ;;  %v2163_v3 = vmov (!%p140_p9), 0.0|0.0   ;;  %vm2164_vm1 = vmmov (!%p140_p9), 0  }
   0xe   : > { %143 = sbr.rel (%p140_p9) target bundleno = 808 (0x328), region = 32  ;;  %1906 = vmatprep.subr.bf16.mxu0 (!%p140_p9), %v2163_v3  ;;  %v188_v4 = vsel (!%p140_p9), %vm183_vm0, %v167_v0, 0  ;;  %v191_v5 = vsel (!%p140_p9), %vm183_vm0, %v168_v1, 0  ;;  %v170_v6 = vld [vmem:[%s2593_s1 + $0x18] sm:$0xff] (!%p140_p9)  ;;  %v194_v7 = vsel (!%p140_p9), %vm183_vm0, %v169_v2, 0  ;;  %1858 = vmatprep.subr.bf16.mxu1 (!%p140_p9), %v2163_v3  ;;  %v171_v16 = vld [vmem:[%s2593_s1 + $0x20] sm:$0xff] (!%p140_p9) }
   0xf   : > { %v236_v8 = vand.u32 (!%p140_p9), 4294901760, %v188_v4  ;;  %v239_v9 = vand.u32 (!%p140_p9), 4294901760, %v191_v5  ;;  %v197_v10 = vsel (!%p140_p9), %vm183_vm0, %v170_v6, 0  ;;  %v242_v13 = vand.u32 (!%p140_p9), 4294901760, %v194_v7  ;;  %v172_v17 = vld [vmem:[%s2593_s1 + $0x28] sm:$0xff] (!%p140_p9)  ;;  %v173_v20 = vld [vmem:[%s2593_s1 + $0x30] sm:$0xff] (!%p140_p9) }
  0x10   : > { %v245_v14 = vand.u32 (!%p140_p9), 4294901760, %v197_v10  ;;  %v2264_v21 = vsel (!%p140_p9), %vm183_vm0, %v171_v16, 0  ;;  %v2267_v22 = vsel (!%p140_p9), %vm183_vm0, %v172_v17, 0  ;;  %v2270_v23 = vsel (!%p140_p9), %vm183_vm0, %v173_v20, 0  ;;  %v174_v27 = vld [vmem:[%s2593_s1 + $0x38] sm:$0xff] (!%p140_p9)  ;;  %v175_v32 = vld [vmem:[%s2593_s1 + $0x40] sm:$0xff] (!%p140_p9) }
  0x11   : > { %v328_v11 = vsub.f32 (!%p140_p9), %v188_v4, %v236_v8  ;;  %v335_v12 = vsub.f32 (!%p140_p9), %v191_v5, %v239_v9  ;;  %v342_v18 = vsub.f32 (!%p140_p9), %v194_v7, %v242_v13  ;;  %v248_v25 = vand.u32 (!%p140_p9), 4294901760, %v2264_v21  ;;  %v176_v40 = vld [vmem:[%s2593_s1 + $0x48] sm:$0xff] (!%p140_p9)  ;;  %p162_p10 = scmp.lt.s32.totalorder (!%p140_p9), %s2208_s16, 1  ;;  %s159_s6 = sand.u32 (!%p140_p9), 1, %s2153_s13  }
  0x12   : > { %v349_v19 = vsub.f32 (!%p140_p9), %v197_v10, %v245_v14  ;;  %v251_v26 = vand.u32 (!%p140_p9), 4294901760, %v2267_v22  ;;  %v254_v28 = vand.u32 (!%p140_p9), 4294901760, %v2270_v23  ;;  %v2279_v31 = vsel (!%p140_p9), %vm183_vm0, %v174_v27, 0  ;;  %s1444_s7 = sshll.u32 (!%p140_p9), %s159_s6, 3  ;;  %s1447_s8 = sshll.u32 (!%p140_p9), %s2208_s16, 7 }
  0x13   : > { %v1907_v15 = vpack.c.bf16 (!%p140_p9), %v335_v12, %v328_v11  ;;  %v329_v29 = vand.u32 (!%p140_p9), 4294901760, %v328_v11  ;;  %v336_v30 = vand.u32 (!%p140_p9), 4294901760, %v335_v12  ;;  %v2165_v33 = vmov (!%p140_p9), 0.0   ;;  %s161_s9 = scalar_lea.vmem (!%p140_p9), [#allocation2], %s1444_s7  ;;  %s2549_s19 = scalar_lea.hbm (!%p140_p9), %s2595_s3, %s1447_s8 }
  0x14   : > { %v1910_v24 = vpack.c.bf16 (!%p140_p9), %v349_v19, %v342_v18  ;;  %1684 = vmatprep.mubr.msk.f32.mxu0 (!%p140_p9), %vm2164_vm1, %v2165_v33  ;;  %v2286_v34 = vpack.c.bf16 (!%p140_p9), %v239_v9, %v236_v8  ;;  %1614 = vmatprep.mubr.msk.f32.mxu1 (!%p140_p9), %vm2164_vm1, %v2165_v33  ;;  %v356_v35 = vsub.f32 (!%p140_p9), %v2264_v21, %v248_v25  ;;  %v343_v37 = vand.u32 (!%p140_p9), 4294901760, %v342_v18  ;;  %v177_v8 = vld [vmem:[%s2593_s1 + $0x50] sm:$0xff] (!%p140_p9)  ;;  %s1381_s10 = sshll.u32 (!%p140_p9), %s161_s9, 4  ;;  %s1368_s20 = scalar_lea.sflag (!%p140_p9), [#allocation3], %s159_s6  ;;  %s2551_s10 = int_to_ptr.vmem [resolvable:$true] %s1381_s10 }
  0x15   : > { %1908 = vmatpush3.bf16.xpose.msra.mxu0 %v1907_v15  ;;  %v363_v36 = vsub.f32 %v2267_v22, %v251_v26  ;;  %v257_v38 = vand.u32 4294901760, %v2279_v31  ;;  %v370_v39 = vsub.f32 %v2270_v23, %v254_v28  ;;  %v2306_v41 = vsel %vm183_vm0, %v175_v32, 0  ;;  %v179_v32 = vld [vmem:[%s2593_s1 + $0x60] sm:$0xff]  ;;  %s163_s11 = scalar_select %p162_p10, %s2208_s16, 1 }
  0x16   : > { %1909 = vmatprep.subr.bf16.mxu0 %v2163_v3  ;;  %1860 = vmatpush3.bf16.xpose.msra.mxu1 %v2286_v34  ;;  %v330_v42 = vsub.f32 %v328_v11, %v329_v29  ;;  %v337_v43 = vsub.f32 %v335_v12, %v336_v30  ;;  %v2309_v44 = vpack.c.bf16 %v336_v30, %v329_v29  ;;  %v350_v47 = vand.u32 4294901760, %v349_v19  ;;  %s2166_s16 = smov [#allocation2]  }
  0x17   : > { %1861 = vmatprep.subr.bf16.mxu1 %v2163_v3  ;;  %v344_v45 = vsub.f32 %v342_v18, %v343_v37  ;;  %v1913_v46 = vpack.c.bf16 %v363_v36, %v356_v35  ;;  %v357_v48 = vand.u32 4294901760, %v356_v35  ;;  %v364_v49 = vand.u32 4294901760, %v363_v36  ;;  %s1445_s17 = sshll.u32 %s163_s11, 3  ;;  %s2103_s25 = sshll.u32 %s2166_s16, 4  ;;  %s2104_s25 = int_to_ptr.vmem [resolvable:$false] %s2103_s25 }
  0x18   : > { %v2312_v50 = vsel %vm183_vm0, %v176_v40, 0  ;;  %v2314_v51 = vpack.c.bf16 %v245_v14, %v242_v13  ;;  %v331_v52 = vand.u32 4294901760, %v330_v42  ;;  %v338_v53 = vand.u32 4294901760, %v337_v43  ;;  %v178_v13 = vld [vmem:[%s2593_s1 + $0x58] sm:$0xff]  ;;  %s165_s24 = scalar_lea.vmem %s2592_s0, %s1445_s17  ;;  %s2105_s26 = scalar_lea.vmem %s2104_s25, 256 }
  0x19   : > { %v345_v54 = vand.u32 4294901760, %v344_v45  ;;  %v351_v55 = vsub.f32 %v349_v19, %v350_v47  ;;  %v2316_v56 = vpack.c.bf16 %v350_v47, %v343_v37  ;;  %v358_v57 = vsub.f32 %v356_v35, %v357_v48  ;;  %p2106_p0 = scmp.lt.s32.totalorder %s2551_s10, %s2104_s25 }
  0x1a   : > { %v377_v58 = vsub.f32 %v2279_v31, %v257_v38  ;;  %v2321_v59 = vpack.c.bf16 %v338_v53, %v331_v52  ;;  %v365_v60 = vsub.f32 %v363_v36, %v364_v49  ;;  %v2323_v61 = vpack.c.bf16 %v364_v49, %v357_v48  ;;  %v180_v36 = vld [vmem:[%s2593_s1 + $0x68] sm:$0xff]  ;;  %v182_v53 = vld [vmem:[%s2593_s1 + $0x78] sm:$0xff] }
  0x1b   : > { %v352_v62 = vand.u32 4294901760, %v351_v55  ;;  %v359_v63 = vand.u32 4294901760, %v358_v57  ;;  %v371_v0 = vand.u32 4294901760, %v370_v39  ;;  %v260_v4 = vand.u32 4294901760, %v2306_v41 }
  0x1c   : > { %v366_v1 = vand.u32 4294901760, %v365_v60  ;;  %v378_v2 = vand.u32 4294901760, %v377_v58  ;;  %v263_v5 = vand.u32 4294901760, %v2312_v50  ;;  %v1916_v12 = vpack.c.bf16 %v377_v58, %v370_v39 }
  0x1d   : > { %1911 = vmatpush3.bf16.xpose.msra.mxu0 %v1910_v24  ;;  %v2330_v6 = vpack.c.bf16 %v352_v62, %v345_v54  ;;  %v372_v7 = vsub.f32 %v370_v39, %v371_v0  ;;  %v2346_v15 = vpack.c.bf16 %v251_v26, %v248_v25  ;;  %v384_v17 = vsub.f32 %v2306_v41, %v260_v4 }
  0x1e   : > { %1912 = vmatprep.subr.bf16.mxu0 %v2163_v3  ;;  %1863 = vmatpush3.bf16.xpose.msra.mxu1 %v2314_v51  ;;  %v2335_v9 = vpack.c.bf16 %v366_v1, %v359_v63  ;;  %v379_v10 = vsub.f32 %v377_v58, %v378_v2  ;;  %v2337_v11 = vpack.c.bf16 %v378_v2, %v371_v0  ;;  %v2351_v19 = vsel %vm183_vm0, %v177_v8, 0 }
  0x1f   : > { %1864 = vmatprep.subr.bf16.mxu1 %v2163_v3  ;;  %v373_v14 = vand.u32 4294901760, %v372_v7  ;;  %v391_v18 = vsub.f32 %v2312_v50, %v263_v5  ;;  %v2354_v20 = vsel %vm183_vm0, %v178_v13, 0  ;;  %v385_v27 = vand.u32 4294901760, %v384_v17  ;;  %v181_v50 = vld [vmem:[%s2593_s1 + $0x70] sm:$0xff] }
  0x20   : > { %v380_v16 = vand.u32 4294901760, %v379_v10  ;;  %v266_v22 = vand.u32 4294901760, %v2351_v19  ;;  %v269_v25 = vand.u32 4294901760, %v2354_v20  ;;  %v2375_v40 = vpack.c.bf16 %v257_v38, %v254_v28 }
  0x21   : > { %v392_v21 = vand.u32 4294901760, %v391_v18  ;;  %v386_v26 = vsub.f32 %v384_v17, %v385_v27  ;;  %v1919_v35 = vpack.c.bf16 %v391_v18, %v384_v17  ;;  %v224_v43 = vsel %vm183_vm0, %v179_v32, 0 }
  0x22   : > { %v2356_v24 = vpack.c.bf16 %v380_v16, %v373_v14  ;;  %v398_v41 = vsub.f32 %v2351_v19, %v266_v22  ;;  %v405_v42 = vsub.f32 %v2354_v20, %v269_v25  ;;  %v272_v23 = vand.u32 4294901760, %v224_v43  ;;  %v166_v20 = vld [vmem:[%s165_s24] sm:$0xff]  ;;  %s2099_s24 = scalar_lea.vmem %s2551_s10, 128 }
  0x23   : > { %v393_v29 = vsub.f32 %v391_v18, %v392_v21  ;;  %v2363_v30 = vpack.c.bf16 %v392_v21, %v385_v27  ;;  %v387_v37 = vand.u32 4294901760, %v386_v26  ;;  %v2395_v57 = vpack.c.bf16 %v263_v5, %v260_v4  ;;  %p2100_p11 = scmp.ne.s32.totalorder %s2551_s10, %s2099_s24  ;;  %p2107_p1 = scmp.lt.s32.totalorder %s2105_s26, %s2099_s24 }
  0x24   : > { %v399_v47 = vand.u32 4294901760, %v398_v41  ;;  %v406_v48 = vand.u32 4294901760, %v405_v42  ;;  %v1922_v52 = vpack.c.bf16 %v405_v42, %v398_v41  ;;  %v412_v58 = vsub.f32 %v224_v43, %v272_v23 }
  0x25   : > { %1914 = vmatpush3.bf16.xpose.msra.mxu0 %v1913_v46  ;;  %v394_v39 = vand.u32 4294901760, %v393_v29  ;;  %v227_v46 = vsel %vm183_vm0, %v180_v36, 0  ;;  %v230_v62 = vsel %vm183_vm0, %v181_v50, 0  ;;  %v233_v0 = vsel %vm183_vm0, %v182_v53, 0  ;;  %p2101_p12 = pnand %p2100_p11, %p2225_p5  ;;  %p2108_p2 = por %p2107_p1, %p2106_p0 }
  0x26   : > { %1915 = vmatprep.subr.bf16.mxu0 %v2163_v3  ;;  %1866 = vmatpush3.bf16.xpose.msra.mxu1 %v2346_v15  ;;  %v275_v28 = vand.u32 4294901760, %v227_v46  ;;  %v400_v31 = vsub.f32 %v398_v41, %v399_v47  ;;  %v407_v38 = vsub.f32 %v405_v42, %v406_v48  ;;  %v2387_v49 = vpack.c.bf16 %v406_v48, %v399_v47 }
  0x27   : > { %1867 = vmatprep.subr.bf16.mxu1 %v2163_v3  ;;  %v2380_v45 = vpack.c.bf16 %v394_v39, %v387_v37  ;;  %v413_v1 = vand.u32 4294901760, %v412_v58  ;;  %v278_v7 = vand.u32 4294901760, %v230_v62  ;;  %v281_v4 = vand.u32 4294901760, %v233_v0  ;;  %p2102_p13 = pneg %p2101_p12 }
  0x28   : > { %v401_v54 = vand.u32 4294901760, %v400_v31  ;;  %v408_v55 = vand.u32 4294901760, %v407_v38  ;;  %v419_v60 = vsub.f32 %v227_v46, %v275_v28  ;;  %v2412_v16 = vpack.c.bf16 %v269_v25, %v266_v22 }
  0x29   : > { %v414_v5 = vsub.f32 %v412_v58, %v413_v1  ;;  %v426_v17 = vsub.f32 %v230_v62, %v278_v7  ;;  %v433_v18 = vsub.f32 %v233_v0, %v281_v4  ;;  %v185_v22 = vsel %vm183_vm0, %v166_v20, 0  ;;  %p2109_p3 = pnand %p2108_p2, %p2102_p13 }
  0x2a   : > { %v2401_v63 = vpack.c.bf16 %v408_v55, %v401_v54  ;;  %v420_v2 = vand.u32 4294901760, %v419_v60  ;;  %v2420_v37 = vpack.c.bf16 %v275_v28, %v272_v23  ;;  %v2422_v39 = vand.u32 4294901760, %v185_v22 }
  0x2b   : > { %v415_v13 = vand.u32 4294901760, %v414_v5  ;;  %v427_v27 = vand.u32 4294901760, %v426_v17  ;;  %v434_v21 = vand.u32 4294901760, %v433_v18  ;;  %v1928_v25 = vpack.c.bf16 %v433_v18, %v426_v17 }
  0x2c   : > { %v421_v8 = vsub.f32 %v419_v60, %v420_v2  ;;  %v2407_v10 = vpack.c.bf16 %v420_v2, %v413_v1  ;;  %v317_v42 = vsub.f32 %v185_v22, %v2422_v39  ;;  %v2428_v46 = vpack.c.bf16 %v281_v4, %v278_v7 }
  0x2d   : > { %1917 = vmatpush3.bf16.xpose.msra.mxu0 %v1916_v12  ;;  %v1925_v12 = vpack.c.bf16 %v419_v60, %v412_v58  ;;  %v428_v26 = vsub.f32 %v426_v17, %v427_v27  ;;  %v435_v29 = vsub.f32 %v433_v18, %v434_v21  ;;  %v2417_v32 = vpack.c.bf16 %v434_v21, %v427_v27 }
  0x2e   : > { %1918 = vmatprep.subr.bf16.mxu0 %v2163_v3  ;;  %1869 = vmatpush3.bf16.xpose.msra.mxu1 %v2375_v40  ;;  %v422_v14 = vand.u32 4294901760, %v421_v8  ;;  %v318_v43 = vand.u32 4294901760, %v317_v42 }
  0x2f   : > { %1870 = vmatprep.subr.bf16.mxu1 %v2163_v3  ;;  %v436_v36 = vand.u32 4294901760, %v435_v29 }
  0x30   : > { %v1901_v19 = vpack.c.bf16 %v422_v14, %v415_v13  ;;  %v319_v47 = vsub.f32 %v317_v42, %v318_v43 }
  0x32   : > { %v320_v48 = vand.u32 4294901760, %v319_v47 }
  0x35   : > { %1920 = vmatpush3.bf16.xpose.msra.mxu0 %v1919_v35  ;;  %v429_v35 = vand.u32 4294901760, %v428_v26 }
  0x36   : > { %1921 = vmatprep.subr.bf16.mxu0 %v2163_v3  ;;  %1872 = vmatpush3.bf16.xpose.msra.mxu1 %v2395_v57 }
  0x37   : > { %1873 = vmatprep.subr.bf16.mxu1 %v2163_v3  ;;  %v1904_v41 = vpack.c.bf16 %v436_v36, %v429_v35 }
  0x3d   : > { %1923 = vmatpush3.bf16.xpose.msra.mxu0 %v1922_v52 }
  0x3e   : > { %1924 = vmatprep.subr.bf16.mxu0 %v2163_v3  ;;  %1875 = vmatpush3.bf16.xpose.msra.mxu1 %v2412_v16 }
  0x3f   : > { %1876 = vmatprep.subr.bf16.mxu1 %v2163_v3 }
  0x45   : > { %1926 = vmatpush3.bf16.xpose.msra.mxu0 %v1925_v12 }
  0x46   : > { %1927 = vmatprep.subr.bf16.mxu0 %v2163_v3  ;;  %1878 = vmatpush3.bf16.xpose.msra.mxu1 %v2420_v37 }
  0x47   : > { %1879 = vmatprep.subr.bf16.mxu1 %v2163_v3 }
  0x4d   : > { %1929 = vmatpush3.bf16.xpose.msra.mxu0 %v1928_v25 }
  0x4e   : > { %1930 = vmatprep.subr.bf16.mxu0 %v2163_v3  ;;  %1881 = vmatpush3.bf16.xpose.msra.mxu1 %v2428_v46 }
  0x4f   : > { %1882 = vmatprep.subr.bf16.mxu1 %v2163_v3 }
  0x54   : > { %1685 = vmatmul.mubr.f32.vlgmr.msra.gmra.mrb[0].mxu0 %v317_v42 }
  0x55   : > { %1932 = vmatpush3.bf16.xpose.msra.mxu0 %v2286_v34  ;;  %1719 = vmatprep.mubr.msk.f32.mxu0 %vm2164_vm1, %v2165_v33 }
  0x56   : > { %1933 = vmatprep.subr.bf16.mxu0 %v2163_v3  ;;  %1615 = vmatmul.mubr.f32.vlgmr.msra.gmra.mrb[0].mxu1 %v320_v48 }
  0x57   : > { %1884 = vmatpush3.bf16.xpose.msra.mxu1 %v2321_v59  ;;  %1649 = vmatprep.mubr.msk.f32.mxu1 %vm2164_vm1, %v2165_v33 }
  0x58   : > { %1885 = vmatprep.subr.bf16.mxu1 %v2163_v3 }
  0x5d   : > { %1935 = vmatpush3.bf16.xpose.msra.mxu0 %v2314_v51 }
  0x5e   : > { %1936 = vmatprep.subr.bf16.mxu0 %v2163_v3 }
  0x5f   : > { %1887 = vmatpush3.bf16.xpose.msra.mxu1 %v2330_v6 }
  0x60   : > { %1888 = vmatprep.subr.bf16.mxu1 %v2163_v3 }
  0x65   : > { %1938 = vmatpush3.bf16.xpose.msra.mxu0 %v2346_v15 }
  0x66   : > { %1939 = vmatprep.subr.bf16.mxu0 %v2163_v3 }
  0x67   : > { %1890 = vmatpush3.bf16.xpose.msra.mxu1 %v2335_v9  ;;  %v878_v9 = vld [vmem:[%s2594_s2 + $0x10] sm:$0xff] }
  0x68   : > { %1891 = vmatprep.subr.bf16.mxu1 %v2163_v3 }
  0x6d   : > { %1941 = vmatpush3.bf16.xpose.msra.mxu0 %v2375_v40 }
  0x6e   : > { %1942 = vmatprep.subr.bf16.mxu0 %v2163_v3 }
  0x6f   : > { %1893 = vmatpush3.bf16.xpose.msra.mxu1 %v2356_v24 }
  0x70   : > { %1894 = vmatprep.subr.bf16.mxu1 %v2163_v3 }
  0x75   : > { %1944 = vmatpush3.bf16.xpose.msra.mxu0 %v2395_v57 }
  0x76   : > { %1945 = vmatprep.subr.bf16.mxu0 %v2163_v3 }
  0x77   : > { %1896 = vmatpush3.bf16.xpose.msra.mxu1 %v2380_v45 }
  0x78   : > { %1897 = vmatprep.subr.bf16.mxu1 %v2163_v3 }
  0x7d   : > { %1947 = vmatpush3.bf16.xpose.msra.mxu0 %v2412_v16 }
  0x7e   : > { %1948 = vmatprep.subr.bf16.mxu0 %v2163_v3 }
  0x7f   : > { %1899 = vmatpush3.bf16.xpose.msra.mxu1 %v2401_v63 }
  0x80   : > { %1900 = vmatprep.subr.bf16.mxu1 %v2163_v3 }
  0x85   : > { %1950 = vmatpush3.bf16.xpose.msra.mxu0 %v2420_v37 }
  0x86   : > { %1951 = vmatprep.subr.bf16.mxu0 %v2163_v3 }
  0x87   : > { %1902 = vmatpush3.bf16.xpose.msra.mxu1 %v1901_v19 }
  0x88   : > { %1903 = vmatprep.subr.bf16.mxu1 %v2163_v3 }
  0x8d   : > { %1953 = vmatpush3.bf16.xpose.msra.mxu0 %v2428_v46 }
  0x8e   : > { %1954 = vmatprep.subr.bf16.mxu0 %v2163_v3 }
  0x8f   : > { %1905 = vmatpush3.bf16.xpose.msra.mxu1 %v1904_v41 }
  0x90   : > { %2002 = vmatprep.subr.bf16.mxu1 %v2163_v3 }
  0x94   : > { %1720 = vmatmul.mubr.f32.vlgmr.msra.gmra.mrb[0].mxu0 %v318_v43 }
  0x95   : > { %1956 = vmatpush3.bf16.xpose.msra.mxu0 %v2309_v44  ;;  %1754 = vmatprep.mubr.msk.f32.mxu0 %vm2164_vm1, %v2165_v33  ;;  %v877_v44 = vld [vmem:[%s2594_s2 + $0x8] sm:$0xff] }
  0x96   : > { %1957 = vmatprep.subr.bf16.mxu0 %v2163_v3  ;;  %1650 = vmatmul.mubr.f32.vlgmr.msra.gmra.mrb[0].mxu1 %v2422_v39 }
  0x97   : > { %1800 = vmatprep.mubr.msk.f32.mxu1 %vm2164_vm1, %v2165_v33 }
  0x9d   : > { %1959 = vmatpush3.bf16.xpose.msra.mxu0 %v2316_v56 }
  0x9e   : > { %1960 = vmatprep.subr.bf16.mxu0 %v2163_v3 }
  0xa5   : > { %1962 = vmatpush3.bf16.xpose.msra.mxu0 %v2323_v61 }
  0xa6   : > { %1963 = vmatprep.subr.bf16.mxu0 %v2163_v3 }
  0xad   : > { %1965 = vmatpush3.bf16.xpose.msra.mxu0 %v2337_v11  ;;  %v879_v11 = vld [vmem:[%s2594_s2 + $0x18] sm:$0xff] }
  0xae   : > { %1966 = vmatprep.subr.bf16.mxu0 %v2163_v3  ;;  %v890_v24 = vand.u32 4294901760, %v879_v11 }
  0xb5   : > { %1968 = vmatpush3.bf16.xpose.msra.mxu0 %v2363_v30 }
  0xb6   : > { %1969 = vmatprep.subr.bf16.mxu0 %v2163_v3 }
  0xbd   : > { %1971 = vmatpush3.bf16.xpose.msra.mxu0 %v2387_v49  ;;  %v982_v49 = vsub.f32 %v879_v11, %v890_v24 }
  0xbe   : > { %1972 = vmatprep.subr.bf16.mxu0 %v2163_v3 }
  0xc5   : > { %1974 = vmatpush3.bf16.xpose.msra.mxu0 %v2407_v10 }
  0xc6   : > { %1975 = vmatprep.subr.bf16.mxu0 %v2163_v3 }
  0xcd   : > { %1977 = vmatpush3.bf16.xpose.msra.mxu0 %v2417_v32 }
  0xce   : > { %1978 = vmatprep.subr.bf16.mxu0 %v2163_v3 }
  0xd4   : > { %1755 = vmatmul.mubr.f32.vlgmr.msra.gmra.mrb[0].mxu0 %v2422_v39 }
  0xd5   : > { %1980 = vmatpush3.bf16.xpose.msra.mxu0 %v2286_v34  ;;  %1789 = vmatprep.mubr.msk.f32.mxu0 %vm2164_vm1, %v2165_v33  ;;  %v876_v34 = vld [vmem:[%s2594_s2] sm:$0xff] }
  0xd6   : > { %1981 = vmatprep.subr.bf16.mxu0 %v2163_v3  ;;  %v881_v56 = vand.u32 4294901760, %v876_v34 }
  0xd8   : > { %v961_v61 = vsub.f32 %v876_v34, %v881_v56 }
  0xdd   : > { %1983 = vmatpush3.bf16.xpose.msra.mxu0 %v2314_v51  ;;  %v884_v51 = vand.u32 4294901760, %v877_v44 }
  0xde   : > { %1984 = vmatprep.subr.bf16.mxu0 %v2163_v3 }
  0xdf   : > { %v2504_v59 = vpack.c.bf16 %v884_v51, %v881_v56  ;;  %v968_v6 = vsub.f32 %v877_v44, %v884_v51 }
  0xe1   : > { %2004 = vmatpush3.bf16.xpose.msra.mxu1 %v2504_v59  ;;  %v969_v45 = vand.u32 4294901760, %v968_v6  ;;  %v2015_v1 = vpack.c.bf16 %v968_v6, %v961_v61 }
  0xe2   : > { %2005 = vmatprep.subr.bf16.mxu1 %v2163_v3 }
  0xe3   : > { %v970_v28 = vsub.f32 %v968_v6, %v969_v45 }
  0xe5   : > { %1986 = vmatpush3.bf16.xpose.msra.mxu0 %v2346_v15  ;;  %v887_v15 = vand.u32 4294901760, %v878_v9  ;;  %v971_v52 = vand.u32 4294901760, %v970_v28 }
  0xe6   : > { %1987 = vmatprep.subr.bf16.mxu0 %v2163_v3 }
  0xe7   : > { %v2006_v30 = vpack.c.bf16 %v890_v24, %v887_v15  ;;  %v975_v38 = vsub.f32 %v878_v9, %v887_v15 }
  0xe9   : > { %2007 = vmatpush3.bf16.xpose.msra.mxu1 %v2006_v30  ;;  %v976_v55 = vand.u32 4294901760, %v975_v38  ;;  %v2018_v2 = vpack.c.bf16 %v982_v49, %v975_v38 }
  0xea   : > { %2008 = vmatprep.subr.bf16.mxu1 %v2163_v3 }
  0xeb   : > { %v977_v58 = vsub.f32 %v975_v38, %v976_v55 }
  0xed   : > { %1989 = vmatpush3.bf16.xpose.msra.mxu0 %v2375_v40  ;;  %v962_v40 = vand.u32 4294901760, %v961_v61  ;;  %v978_v62 = vand.u32 4294901760, %v977_v58 }
  0xee   : > { %1990 = vmatprep.subr.bf16.mxu0 %v2163_v3 }
  0xef   : > { %v963_v23 = vsub.f32 %v961_v61, %v962_v40  ;;  %v2027_v7 = vpack.c.bf16 %v969_v45, %v962_v40 }
  0xf1   : > { %v964_v50 = vand.u32 4294901760, %v963_v23 }
  0xf3   : > { %v2009_v54 = vpack.c.bf16 %v971_v52, %v964_v50 }
  0xf5   : > { %1992 = vmatpush3.bf16.xpose.msra.mxu0 %v2395_v57  ;;  %v983_v57 = vand.u32 4294901760, %v982_v49 }
  0xf6   : > { %1993 = vmatprep.subr.bf16.mxu0 %v2163_v3 }
  0xf7   : > { %v984_v60 = vsub.f32 %v982_v49, %v983_v57  ;;  %v2030_v4 = vpack.c.bf16 %v983_v57, %v976_v55 }
  0xf9   : > { %v985_v63 = vand.u32 4294901760, %v984_v60 }
  0xfb   : > { %v2012_v0 = vpack.c.bf16 %v985_v63, %v978_v62 }
  0xfd   : > { %1995 = vmatpush3.bf16.xpose.msra.mxu0 %v2412_v16 }
  0xfe   : > { %1996 = vmatprep.subr.bf16.mxu0 %v2163_v3 }
 0x105   : > { %1998 = vmatpush3.bf16.xpose.msra.mxu0 %v2420_v37 }
 0x106   : > { %1999 = vmatprep.subr.bf16.mxu0 %v2163_v3 }
 0x10d   : > { %2001 = vmatpush3.bf16.xpose.msra.mxu0 %v2428_v46 }
 0x114   : > { %1790 = vmatmul.mubr.f32.vlgmr.msra.gmra.mrb[0].mxu0 %v2422_v39 }
 0x169   : > { %v473_v31 = vpop.f32.mrb[0].mxu1 }
 0x16a   : > { %v1651_v53 = vpop.f32.mrb[1].mxu1 }
 0x1e7   : > { %v872_v5 = vpop.f32.mrb[0].mxu0 }
 0x1e8   : > { %v2038_v8 = vadd.f32 %v872_v5, %v473_v31  ;;  %v1791_v10 = vpop.f32.mrb[1].mxu0 }
 0x1ea   : > { %v949_v12 = vand.u32 4294901760, %v2038_v8 }
 0x1ec   : > { %v950_v13 = vsub.f32 %v2038_v8, %v949_v12 }
 0x1ee   : > { %v951_v14 = vand.u32 4294901760, %v950_v13 }
 0x1f0   : > { %v952_v16 = vsub.f32 %v950_v13, %v951_v14 }
 0x1f2   : > { %v953_v17 = vand.u32 4294901760, %v952_v16 }
 0x1f4   : > { %1801 = vmatmul.mubr.f32.vlgmr.msra.gmra.mrb[2].mxu1 %v953_v17 }
 0x1f5   : > { %2010 = vmatpush3.bf16.xpose.msra.mxu1 %v2009_v54  ;;  %1811 = vmatprep.mubr.msk.f32.mxu1 %vm2164_vm1, %v2165_v33 }
 0x1f6   : > { %2011 = vmatprep.subr.bf16.mxu1 %v2163_v3 }
 0x1fd   : > { %2013 = vmatpush3.bf16.xpose.msra.mxu1 %v2012_v0 }
 0x1fe   : > { %2014 = vmatprep.subr.bf16.mxu1 %v2163_v3 }
 0x204   : > { %1812 = vmatmul.mubr.f32.vlgmr.msra.gmra.mrb[2].mxu1 %v949_v12 }
 0x205   : > { %2016 = vmatpush3.bf16.xpose.msra.mxu1 %v2015_v1  ;;  %1822 = vmatprep.mubr.msk.f32.mxu1 %vm2164_vm1, %v2165_v33 }
 0x206   : > { %2017 = vmatprep.subr.bf16.mxu1 %v2163_v3 }
 0x20d   : > { %2019 = vmatpush3.bf16.xpose.msra.mxu1 %v2018_v2 }
 0x20e   : > { %2020 = vmatprep.subr.bf16.mxu1 %v2163_v3 }
 0x214   : > { %1823 = vmatmul.mubr.f32.vlgmr.msra.gmra.mrb[2].mxu1 %v950_v13 }
 0x215   : > { %2022 = vmatpush3.bf16.xpose.msra.mxu1 %v2504_v59  ;;  %1833 = vmatprep.mubr.msk.f32.mxu1 %vm2164_vm1, %v2165_v33 }
 0x216   : > { %2023 = vmatprep.subr.bf16.mxu1 %v2163_v3 }
 0x21d   : > { %2025 = vmatpush3.bf16.xpose.msra.mxu1 %v2006_v30 }
 0x21e   : > { %2026 = vmatprep.subr.bf16.mxu1 %v2163_v3 }
 0x224   : > { %1834 = vmatmul.mubr.f32.vlgmr.msra.gmra.mrb[2].mxu1 %v951_v14 }
 0x225   : > { %2028 = vmatpush3.bf16.xpose.msra.mxu1 %v2027_v7  ;;  %1844 = vmatprep.mubr.msk.f32.mxu1 %vm2164_vm1, %v2165_v33 }
 0x226   : > { %2029 = vmatprep.subr.bf16.mxu1 %v2163_v3 }
 0x22d   : > { %2031 = vmatpush3.bf16.xpose.msra.mxu1 %v2030_v4 }
 0x22e   : > { %2032 = vmatprep.subr.bf16.mxu1 %v2163_v3 }
 0x234   : > { %1845 = vmatmul.mubr.f32.vlgmr.msra.gmra.mrb[2].mxu1 %v949_v12 }
 0x235   : > { %2034 = vmatpush3.bf16.xpose.msra.mxu1 %v2504_v59  ;;  %1855 = vmatprep.mubr.msk.f32.mxu1 %vm2164_vm1, %v2165_v33 }
 0x236   : > { %2035 = vmatprep.subr.bf16.mxu1 %v2163_v3 }
 0x23d   : > { %2037 = vmatpush3.bf16.xpose.msra.mxu1 %v2006_v30 }
 0x244   : > { %1856 = vmatmul.mubr.f32.vlgmr.msra.gmra.mrb[2].mxu1 %v949_v12 }
 0x317   : > { %v1361_v18 = vpop.f32.mrb[2].mxu1 }
 0x318   : > { %v1365_v19 = vmul.f32 2.0, %v1361_v18  ;;  %v1857_v20 = vpop.f32.mrb[3].mxu1 }
 0x31a   : > { %1366 = vst.msk [vmem:[%s161_s9] sm:$0xff] %vm183_vm0, %v1365_v19 }
 0x31b   : > { %2112 = shalt.err (!%p2109_p3)
}
 0x31c   : > { %s2113_s27 = scalar_lea.hbm %s2549_s19, 128  ;;  %s2117_s30 = scalar_lea.hbm %s2595_s3, 256 }
 0x31d   : > { %p2114_p4 = scmp.ne.s32.totalorder %s2549_s19, %s2113_s27  ;;  %p2118_p9 = scmp.lt.u32.totalorder %s2549_s19, %s2595_s3 }
 0x31e   : > { %p2119_p10 = scmp.lt.u32.totalorder %s2117_s30, %s2113_s27  ;;  %p2121_p12 = scmp.lt.u32.totalorder %s2113_s27, %s2549_s19 }
 0x31f   : > { %p2115_p7 = pnand %p2114_p4, %p2225_p5 }
 0x320   : > { %p2120_p11 = por %p2119_p10, %p2118_p9 }
 0x321   : > { %p2116_p8 = pneg %p2115_p7 }
 0x322   : > { %p2122_p13 = por %p2121_p12, %p2120_p11 }
 0x324   : > { %p2123_p0 = pnand %p2122_p13, %p2116_p8 }
 0x326   : > { %2126 = shalt.err (!%p2123_p0)
}
 0x327   : > { %2057 = dma.vmem_to_hbm [thread:$0]  (%p2225_p5), %s2551_s10, 128, %s2549_s19, %s1368_s20  }
 0x328 PF: > { %p2063_p1 = scmp.ge.s32.totalorder %s2161_s15, 2  ;;  %s1393_s6 = sand.u32 1, %s2149_s12  }
 0x329   : > { %s1394_s7 = scalar_lea.sflag [#allocation3], %s1393_s6 }
 0x32a   : > { %p2060_p2 = pnand %p2063_p1, %p2229_p6 }
 0x32c   : > { %2144 = dma.done.wait (!%p2060_p2), %s1394_s7, 128  }
 0x32d   : > { %2146 = vsyncadd (!%p2060_p2), %s1394_s7, 4294967168  ;;  %p13_p3 = scmp.ge.s32.totalorder %s2212_s18, 4   ;;  %s2598_s12 = smov %s2153_s13 }
 0x32e   : > { %s2599_s13 = smov %s2157_s14  ;;  %s2600_s14 = smov %s2223_s21 }
 0x32f   : > { %s2601_s15 = smov %s2212_s18  ;;  %15 = sbr.rel (!%p13_p3) target bundleno = 3 (0x3), region = 67 }
 0x336   :  { %1399 = vsyncpa [#allocation3], 1 }
 0x337   :  { %1401 = vsyncpa [#allocation3 + $0x1], 1 }

// kernel: tpu_custom_call.1
= control target key start
LH: loop header
LB: loop body
LE: loop exit
PB: predicated region body
PF: predicated region fallthrough
CT: control target
= control target key end

     0   :  { %8 = vsyncpa [#allocation3], 0  ;;  %s2592_s0 = inlined_call_operand.vmem [shape: f32[16,32], index: 0, kind: input, shape index: {}]   ;;  %s2593_s1 = inlined_call_operand.vmem [shape: f32[128,32], index: 1, kind: input, shape index: {}]   ;;  %s2594_s2 = inlined_call_operand.vmem [shape: f32[32,128], index: 2, kind: input, shape index: {}]   ;;  %s2595_s3 = inlined_call_operand.hbm [shape: f32[16,32], index: 3, kind: output, shape index: {}]  }
   0x1   :  { %10 = vsyncpa [#allocation3 + $0x1], 0  ;;  %s2187_s12 = smov 0   ;;  %s2189_s13 = smov 0  }
   0x2   :  { %s2191_s14 = smov 0   ;;  %s2193_s15 = smov 0  }
   0x3 LB: > { %s2208_s16 = sadd.s32 4294967295, %s2161_s15   ;;  %s1440_s17 = sadd.s32 4294967294, %s2161_s15   ;;  %s2161_s15 = sphi %s2193_s15, %s2601_s15   ;;  %s2157_s14 = sphi %s2191_s14, %s2600_s14   ;;  %s2153_s13 = sphi %s2189_s13, %s2599_s13   ;;  %s2149_s12 = sphi %s2187_s12, %s2598_s12  }
   0x4   : > { %s2212_s18 = sadd.s32 1, %s2161_s15   ;;  %s91_s19 = sadd.s32 1, %s2157_s14 }
   0x5   : > { %s88_s20 = ssub.s32 %s2161_s15, %s2212_s18  ;;  %p101_p0 = scmp.ne.s32.totalorder %s2157_s14, %s2153_s13 }
   0x6   : > { %p89_p1 = scmp.eq.s32.totalorder %s88_s20, 0  ;;  %p102_p2 = scmp.eq.s32.totalorder %s2208_s16, 1 }
   0x7   : > { %p107_p3 = scmp.ne.s32.totalorder %s2153_s13, %s2149_s12  ;;  %p108_p4 = scmp.eq.s32.totalorder %s1440_s17, 1 }
   0x8   : > { %s2223_s21 = scalar_select %p89_p1, %s2157_s14, %s91_s19  }
   0x9   : > { %p2225_p5 = por %p102_p2, %p101_p0  ;;  %p2229_p6 = por %p108_p4, %p107_p3 }
   0xa   : > { %p1443_p7 = scmp.ge.s32.totalorder %s2161_s15, 1  ;;  %p139_p8 = scmp.lt.s32.totalorder %s2161_s15, 3 }
   0xc   : > { %p140_p9 = pnand %p1443_p7, %p139_p8 }
   0xd   : > { %v167_v0 = vld [vmem:[%s2593_s1] sm:$0xff] (!%p140_p9)  ;;  %v168_v1 = vld [vmem:[%s2593_s1 + $0x8] sm:$0xff] (!%p140_p9)  ;;  %vm183_vm0 = vcmask (!%p140_p9), 261120   ;;  %v169_v2 = vld [vmem:[%s2593_s1 + $0x10] sm:$0xff] (!%p140_p9)  ;;  %v2163_v3 = vmov (!%p140_p9), 0.0|0.0   ;;  %vm2164_vm1 = vmmov (!%p140_p9), 0  }
   0xe   : > { %143 = sbr.rel (%p140_p9) target bundleno = 808 (0x328), region = 32  ;;  %1906 = vmatprep.subr.bf16.mxu0 (!%p140_p9), %v2163_v3  ;;  %v188_v4 = vsel (!%p140_p9), %vm183_vm0, %v167_v0, 0  ;;  %v191_v5 = vsel (!%p140_p9), %vm183_vm0, %v168_v1, 0  ;;  %v170_v6 = vld [vmem:[%s2593_s1 + $0x18] sm:$0xff] (!%p140_p9)  ;;  %v194_v7 = vsel (!%p140_p9), %vm183_vm0, %v169_v2, 0  ;;  %1858 = vmatprep.subr.bf16.mxu1 (!%p140_p9), %v2163_v3  ;;  %v171_v16 = vld [vmem:[%s2593_s1 + $0x20] sm:$0xff] (!%p140_p9) }
   0xf   : > { %v236_v8 = vand.u32 (!%p140_p9), 4294901760, %v188_v4  ;;  %v239_v9 = vand.u32 (!%p140_p9), 4294901760, %v191_v5  ;;  %v197_v10 = vsel (!%p140_p9), %vm183_vm0, %v170_v6, 0  ;;  %v242_v13 = vand.u32 (!%p140_p9), 4294901760, %v194_v7  ;;  %v172_v17 = vld [vmem:[%s2593_s1 + $0x28] sm:$0xff] (!%p140_p9)  ;;  %v173_v20 = vld [vmem:[%s2593_s1 + $0x30] sm:$0xff] (!%p140_p9) }
  0x10   : > { %v245_v14 = vand.u32 (!%p140_p9), 4294901760, %v197_v10  ;;  %v2264_v21 = vsel (!%p140_p9), %vm183_vm0, %v171_v16, 0  ;;  %v2267_v22 = vsel (!%p140_p9), %vm183_vm0, %v172_v17, 0  ;;  %v2270_v23 = vsel (!%p140_p9), %vm183_vm0, %v173_v20, 0  ;;  %v174_v27 = vld [vmem:[%s2593_s1 + $0x38] sm:$0xff] (!%p140_p9)  ;;  %v175_v32 = vld [vmem:[%s2593_s1 + $0x40] sm:$0xff] (!%p140_p9) }
  0x11   : > { %v328_v11 = vsub.f32 (!%p140_p9), %v188_v4, %v236_v8  ;;  %v335_v12 = vsub.f32 (!%p140_p9), %v191_v5, %v239_v9  ;;  %v342_v18 = vsub.f32 (!%p140_p9), %v194_v7, %v242_v13  ;;  %v248_v25 = vand.u32 (!%p140_p9), 4294901760, %v2264_v21  ;;  %v176_v40 = vld [vmem:[%s2593_s1 + $0x48] sm:$0xff] (!%p140_p9)  ;;  %p162_p10 = scmp.lt.s32.totalorder (!%p140_p9), %s2208_s16, 1  ;;  %s159_s6 = sand.u32 (!%p140_p9), 1, %s2153_s13  }
  0x12   : > { %v349_v19 = vsub.f32 (!%p140_p9), %v197_v10, %v245_v14  ;;  %v251_v26 = vand.u32 (!%p140_p9), 4294901760, %v2267_v22  ;;  %v254_v28 = vand.u32 (!%p140_p9), 4294901760, %v2270_v23  ;;  %v2279_v31 = vsel (!%p140_p9), %vm183_vm0, %v174_v27, 0  ;;  %s1444_s7 = sshll.u32 (!%p140_p9), %s159_s6, 3  ;;  %s1447_s8 = sshll.u32 (!%p140_p9), %s2208_s16, 7 }
  0x13   : > { %v1907_v15 = vpack.c.bf16 (!%p140_p9), %v335_v12, %v328_v11  ;;  %v329_v29 = vand.u32 (!%p140_p9), 4294901760, %v328_v11  ;;  %v336_v30 = vand.u32 (!%p140_p9), 4294901760, %v335_v12  ;;  %v2165_v33 = vmov (!%p140_p9), 0.0   ;;  %s161_s9 = scalar_lea.vmem (!%p140_p9), [#allocation2], %s1444_s7  ;;  %s2549_s19 = scalar_lea.hbm (!%p140_p9), %s2595_s3, %s1447_s8 }
  0x14   : > { %v1910_v24 = vpack.c.bf16 (!%p140_p9), %v349_v19, %v342_v18  ;;  %1684 = vmatprep.mubr.msk.f32.mxu0 (!%p140_p9), %vm2164_vm1, %v2165_v33  ;;  %v2286_v34 = vpack.c.bf16 (!%p140_p9), %v239_v9, %v236_v8  ;;  %1614 = vmatprep.mubr.msk.f32.mxu1 (!%p140_p9), %vm2164_vm1, %v2165_v33  ;;  %v356_v35 = vsub.f32 (!%p140_p9), %v2264_v21, %v248_v25  ;;  %v343_v37 = vand.u32 (!%p140_p9), 4294901760, %v342_v18  ;;  %v177_v8 = vld [vmem:[%s2593_s1 + $0x50] sm:$0xff] (!%p140_p9)  ;;  %s1381_s10 = sshll.u32 (!%p140_p9), %s161_s9, 4  ;;  %s1368_s20 = scalar_lea.sflag (!%p140_p9), [#allocation3], %s159_s6  ;;  %s2551_s10 = int_to_ptr.vmem [resolvable:$true] %s1381_s10 }
  0x15   : > { %1908 = vmatpush3.bf16.xpose.msra.mxu0 %v1907_v15  ;;  %v363_v36 = vsub.f32 %v2267_v22, %v251_v26  ;;  %v257_v38 = vand.u32 4294901760, %v2279_v31  ;;  %v370_v39 = vsub.f32 %v2270_v23, %v254_v28  ;;  %v2306_v41 = vsel %vm183_vm0, %v175_v32, 0  ;;  %v179_v32 = vld [vmem:[%s2593_s1 + $0x60] sm:$0xff]  ;;  %s163_s11 = scalar_select %p162_p10, %s2208_s16, 1 }
  0x16   : > { %1909 = vmatprep.subr.bf16.mxu0 %v2163_v3  ;;  %1860 = vmatpush3.bf16.xpose.msra.mxu1 %v2286_v34  ;;  %v330_v42 = vsub.f32 %v328_v11, %v329_v29  ;;  %v337_v43 = vsub.f32 %v335_v12, %v336_v30  ;;  %v2309_v44 = vpack.c.bf16 %v336_v30, %v329_v29  ;;  %v350_v47 = vand.u32 4294901760, %v349_v19  ;;  %s2166_s16 = smov [#allocation2]  }
  0x17   : > { %1861 = vmatprep.subr.bf16.mxu1 %v2163_v3  ;;  %v344_v45 = vsub.f32 %v342_v18, %v343_v37  ;;  %v1913_v46 = vpack.c.bf16 %v363_v36, %v356_v35  ;;  %v357_v48 = vand.u32 4294901760, %v356_v35  ;;  %v364_v49 = vand.u32 4294901760, %v363_v36  ;;  %s1445_s17 = sshll.u32 %s163_s11, 3  ;;  %s2103_s25 = sshll.u32 %s2166_s16, 4  ;;  %s2104_s25 = int_to_ptr.vmem [resolvable:$false] %s2103_s25 }
  0x18   : > { %v2312_v50 = vsel %vm183_vm0, %v176_v40, 0  ;;  %v2314_v51 = vpack.c.bf16 %v245_v14, %v242_v13  ;;  %v331_v52 = vand.u32 4294901760, %v330_v42  ;;  %v338_v53 = vand.u32 4294901760, %v337_v43  ;;  %v178_v13 = vld [vmem:[%s2593_s1 + $0x58] sm:$0xff]  ;;  %s165_s24 = scalar_lea.vmem %s2592_s0, %s1445_s17  ;;  %s2105_s26 = scalar_lea.vmem %s2104_s25, 256 }
  0x19   : > { %v345_v54 = vand.u32 4294901760, %v344_v45  ;;  %v351_v55 = vsub.f32 %v349_v19, %v350_v47  ;;  %v2316_v56 = vpack.c.bf16 %v350_v47, %v343_v37  ;;  %v358_v57 = vsub.f32 %v356_v35, %v357_v48  ;;  %p2106_p0 = scmp.lt.s32.totalorder %s2551_s10, %s2104_s25 }
  0x1a   : > { %v377_v58 = vsub.f32 %v2279_v31, %v257_v38  ;;  %v2321_v59 = vpack.c.bf16 %v338_v53, %v331_v52  ;;  %v365_v60 = vsub.f32 %v363_v36, %v364_v49  ;;  %v2323_v61 = vpack.c.bf16 %v364_v49, %v357_v48  ;;  %v180_v36 = vld [vmem:[%s2593_s1 + $0x68] sm:$0xff]  ;;  %v182_v53 = vld [vmem:[%s2593_s1 + $0x78] sm:$0xff] }
  0x1b   : > { %v352_v62 = vand.u32 4294901760, %v351_v55  ;;  %v359_v63 = vand.u32 4294901760, %v358_v57  ;;  %v371_v0 = vand.u32 4294901760, %v370_v39  ;;  %v260_v4 = vand.u32 4294901760, %v2306_v41 }
  0x1c   : > { %v366_v1 = vand.u32 4294901760, %v365_v60  ;;  %v378_v2 = vand.u32 4294901760, %v377_v58  ;;  %v263_v5 = vand.u32 4294901760, %v2312_v50  ;;  %v1916_v12 = vpack.c.bf16 %v377_v58, %v370_v39 }
  0x1d   : > { %1911 = vmatpush3.bf16.xpose.msra.mxu0 %v1910_v24  ;;  %v2330_v6 = vpack.c.bf16 %v352_v62, %v345_v54  ;;  %v372_v7 = vsub.f32 %v370_v39, %v371_v0  ;;  %v2346_v15 = vpack.c.bf16 %v251_v26, %v248_v25  ;;  %v384_v17 = vsub.f32 %v2306_v41, %v260_v4 }
  0x1e   : > { %1912 = vmatprep.subr.bf16.mxu0 %v2163_v3  ;;  %1863 = vmatpush3.bf16.xpose.msra.mxu1 %v2314_v51  ;;  %v2335_v9 = vpack.c.bf16 %v366_v1, %v359_v63  ;;  %v379_v10 = vsub.f32 %v377_v58, %v378_v2  ;;  %v2337_v11 = vpack.c.bf16 %v378_v2, %v371_v0  ;;  %v2351_v19 = vsel %vm183_vm0, %v177_v8, 0 }
  0x1f   : > { %1864 = vmatprep.subr.bf16.mxu1 %v2163_v3  ;;  %v373_v14 = vand.u32 4294901760, %v372_v7  ;;  %v391_v18 = vsub.f32 %v2312_v50, %v263_v5  ;;  %v2354_v20 = vsel %vm183_vm0, %v178_v13, 0  ;;  %v385_v27 = vand.u32 4294901760, %v384_v17  ;;  %v181_v50 = vld [vmem:[%s2593_s1 + $0x70] sm:$0xff] }
  0x20   : > { %v380_v16 = vand.u32 4294901760, %v379_v10  ;;  %v266_v22 = vand.u32 4294901760, %v2351_v19  ;;  %v269_v25 = vand.u32 4294901760, %v2354_v20  ;;  %v2375_v40 = vpack.c.bf16 %v257_v38, %v254_v28 }
  0x21   : > { %v392_v21 = vand.u32 4294901760, %v391_v18  ;;  %v386_v26 = vsub.f32 %v384_v17, %v385_v27  ;;  %v1919_v35 = vpack.c.bf16 %v391_v18, %v384_v17  ;;  %v224_v43 = vsel %vm183_vm0, %v179_v32, 0 }
  0x22   : > { %v2356_v24 = vpack.c.bf16 %v380_v16, %v373_v14  ;;  %v398_v41 = vsub.f32 %v2351_v19, %v266_v22  ;;  %v405_v42 = vsub.f32 %v2354_v20, %v269_v25  ;;  %v272_v23 = vand.u32 4294901760, %v224_v43  ;;  %v166_v20 = vld [vmem:[%s165_s24] sm:$0xff]  ;;  %s2099_s24 = scalar_lea.vmem %s2551_s10, 128 }
  0x23   : > { %v393_v29 = vsub.f32 %v391_v18, %v392_v21  ;;  %v2363_v30 = vpack.c.bf16 %v392_v21, %v385_v27  ;;  %v387_v37 = vand.u32 4294901760, %v386_v26  ;;  %v2395_v57 = vpack.c.bf16 %v263_v5, %v260_v4  ;;  %p2100_p11 = scmp.ne.s32.totalorder %s2551_s10, %s2099_s24  ;;  %p2107_p1 = scmp.lt.s32.totalorder %s2105_s26, %s2099_s24 }
  0x24   : > { %v399_v47 = vand.u32 4294901760, %v398_v41  ;;  %v406_v48 = vand.u32 4294901760, %v405_v42  ;;  %v1922_v52 = vpack.c.bf16 %v405_v42, %v398_v41  ;;  %v412_v58 = vsub.f32 %v224_v43, %v272_v23 }
  0x25   : > { %1914 = vmatpush3.bf16.xpose.msra.mxu0 %v1913_v46  ;;  %v394_v39 = vand.u32 4294901760, %v393_v29  ;;  %v227_v46 = vsel %vm183_vm0, %v180_v36, 0  ;;  %v230_v62 = vsel %vm183_vm0, %v181_v50, 0  ;;  %v233_v0 = vsel %vm183_vm0, %v182_v53, 0  ;;  %p2101_p12 = pnand %p2100_p11, %p2225_p5  ;;  %p2108_p2 = por %p2107_p1, %p2106_p0 }
  0x26   : > { %1915 = vmatprep.subr.bf16.mxu0 %v2163_v3  ;;  %1866 = vmatpush3.bf16.xpose.msra.mxu1 %v2346_v15  ;;  %v275_v28 = vand.u32 4294901760, %v227_v46  ;;  %v400_v31 = vsub.f32 %v398_v41, %v399_v47  ;;  %v407_v38 = vsub.f32 %v405_v42, %v406_v48  ;;  %v2387_v49 = vpack.c.bf16 %v406_v48, %v399_v47 }
  0x27   : > { %1867 = vmatprep.subr.bf16.mxu1 %v2163_v3  ;;  %v2380_v45 = vpack.c.bf16 %v394_v39, %v387_v37  ;;  %v413_v1 = vand.u32 4294901760, %v412_v58  ;;  %v278_v7 = vand.u32 4294901760, %v230_v62  ;;  %v281_v4 = vand.u32 4294901760, %v233_v0  ;;  %p2102_p13 = pneg %p2101_p12 }
  0x28   : > { %v401_v54 = vand.u32 4294901760, %v400_v31  ;;  %v408_v55 = vand.u32 4294901760, %v407_v38  ;;  %v419_v60 = vsub.f32 %v227_v46, %v275_v28  ;;  %v2412_v16 = vpack.c.bf16 %v269_v25, %v266_v22 }
  0x29   : > { %v414_v5 = vsub.f32 %v412_v58, %v413_v1  ;;  %v426_v17 = vsub.f32 %v230_v62, %v278_v7  ;;  %v433_v18 = vsub.f32 %v233_v0, %v281_v4  ;;  %v185_v22 = vsel %vm183_vm0, %v166_v20, 0  ;;  %p2109_p3 = pnand %p2108_p2, %p2102_p13 }
  0x2a   : > { %v2401_v63 = vpack.c.bf16 %v408_v55, %v401_v54  ;;  %v420_v2 = vand.u32 4294901760, %v419_v60  ;;  %v2420_v37 = vpack.c.bf16 %v275_v28, %v272_v23  ;;  %v2422_v39 = vand.u32 4294901760, %v185_v22 }
  0x2b   : > { %v415_v13 = vand.u32 4294901760, %v414_v5  ;;  %v427_v27 = vand.u32 4294901760, %v426_v17  ;;  %v434_v21 = vand.u32 4294901760, %v433_v18  ;;  %v1928_v25 = vpack.c.bf16 %v433_v18, %v426_v17 }
  0x2c   : > { %v421_v8 = vsub.f32 %v419_v60, %v420_v2  ;;  %v2407_v10 = vpack.c.bf16 %v420_v2, %v413_v1  ;;  %v317_v42 = vsub.f32 %v185_v22, %v2422_v39  ;;  %v2428_v46 = vpack.c.bf16 %v281_v4, %v278_v7 }
  0x2d   : > { %1917 = vmatpush3.bf16.xpose.msra.mxu0 %v1916_v12  ;;  %v1925_v12 = vpack.c.bf16 %v419_v60, %v412_v58  ;;  %v428_v26 = vsub.f32 %v426_v17, %v427_v27  ;;  %v435_v29 = vsub.f32 %v433_v18, %v434_v21  ;;  %v2417_v32 = vpack.c.bf16 %v434_v21, %v427_v27 }
  0x2e   : > { %1918 = vmatprep.subr.bf16.mxu0 %v2163_v3  ;;  %1869 = vmatpush3.bf16.xpose.msra.mxu1 %v2375_v40  ;;  %v422_v14 = vand.u32 4294901760, %v421_v8  ;;  %v318_v43 = vand.u32 4294901760, %v317_v42 }
  0x2f   : > { %1870 = vmatprep.subr.bf16.mxu1 %v2163_v3  ;;  %v436_v36 = vand.u32 4294901760, %v435_v29 }
  0x30   : > { %v1901_v19 = vpack.c.bf16 %v422_v14, %v415_v13  ;;  %v319_v47 = vsub.f32 %v317_v42, %v318_v43 }
  0x32   : > { %v320_v48 = vand.u32 4294901760, %v319_v47 }
  0x35   : > { %1920 = vmatpush3.bf16.xpose.msra.mxu0 %v1919_v35  ;;  %v429_v35 = vand.u32 4294901760, %v428_v26 }
  0x36   : > { %1921 = vmatprep.subr.bf16.mxu0 %v2163_v3  ;;  %1872 = vmatpush3.bf16.xpose.msra.mxu1 %v2395_v57 }
  0x37   : > { %1873 = vmatprep.subr.bf16.mxu1 %v2163_v3  ;;  %v1904_v41 = vpack.c.bf16 %v436_v36, %v429_v35 }
  0x3d   : > { %1923 = vmatpush3.bf16.xpose.msra.mxu0 %v1922_v52 }
  0x3e   : > { %1924 = vmatprep.subr.bf16.mxu0 %v2163_v3  ;;  %1875 = vmatpush3.bf16.xpose.msra.mxu1 %v2412_v16 }
  0x3f   : > { %1876 = vmatprep.subr.bf16.mxu1 %v2163_v3 }
  0x45   : > { %1926 = vmatpush3.bf16.xpose.msra.mxu0 %v1925_v12 }
  0x46   : > { %1927 = vmatprep.subr.bf16.mxu0 %v2163_v3  ;;  %1878 = vmatpush3.bf16.xpose.msra.mxu1 %v2420_v37 }
  0x47   : > { %1879 = vmatprep.subr.bf16.mxu1 %v2163_v3 }
  0x4d   : > { %1929 = vmatpush3.bf16.xpose.msra.mxu0 %v1928_v25 }
  0x4e   : > { %1930 = vmatprep.subr.bf16.mxu0 %v2163_v3  ;;  %1881 = vmatpush3.bf16.xpose.msra.mxu1 %v2428_v46 }
  0x4f   : > { %1882 = vmatprep.subr.bf16.mxu1 %v2163_v3 }
  0x54   : > { %1685 = vmatmul.mubr.f32.vlgmr.msra.gmra.mrb[0].mxu0 %v317_v42 }
  0x55   : > { %1932 = vmatpush3.bf16.xpose.msra.mxu0 %v2286_v34  ;;  %1719 = vmatprep.mubr.msk.f32.mxu0 %vm2164_vm1, %v2165_v33 }
  0x56   : > { %1933 = vmatprep.subr.bf16.mxu0 %v2163_v3  ;;  %1615 = vmatmul.mubr.f32.vlgmr.msra.gmra.mrb[0].mxu1 %v320_v48 }
  0x57   : > { %1884 = vmatpush3.bf16.xpose.msra.mxu1 %v2321_v59  ;;  %1649 = vmatprep.mubr.msk.f32.mxu1 %vm2164_vm1, %v2165_v33 }
  0x58   : > { %1885 = vmatprep.subr.bf16.mxu1 %v2163_v3 }
  0x5d   : > { %1935 = vmatpush3.bf16.xpose.msra.mxu0 %v2314_v51 }
  0x5e   : > { %1936 = vmatprep.subr.bf16.mxu0 %v2163_v3 }
  0x5f   : > { %1887 = vmatpush3.bf16.xpose.msra.mxu1 %v2330_v6 }
  0x60   : > { %1888 = vmatprep.subr.bf16.mxu1 %v2163_v3 }
  0x65   : > { %1938 = vmatpush3.bf16.xpose.msra.mxu0 %v2346_v15 }
  0x66   : > { %1939 = vmatprep.subr.bf16.mxu0 %v2163_v3 }
  0x67   : > { %1890 = vmatpush3.bf16.xpose.msra.mxu1 %v2335_v9  ;;  %v878_v9 = vld [vmem:[%s2594_s2 + $0x10] sm:$0xff] }
  0x68   : > { %1891 = vmatprep.subr.bf16.mxu1 %v2163_v3 }
  0x6d   : > { %1941 = vmatpush3.bf16.xpose.msra.mxu0 %v2375_v40 }
  0x6e   : > { %1942 = vmatprep.subr.bf16.mxu0 %v2163_v3 }
  0x6f   : > { %1893 = vmatpush3.bf16.xpose.msra.mxu1 %v2356_v24 }
  0x70   : > { %1894 = vmatprep.subr.bf16.mxu1 %v2163_v3 }
  0x75   : > { %1944 = vmatpush3.bf16.xpose.msra.mxu0 %v2395_v57 }
  0x76   : > { %1945 = vmatprep.subr.bf16.mxu0 %v2163_v3 }
  0x77   : > { %1896 = vmatpush3.bf16.xpose.msra.mxu1 %v2380_v45 }
  0x78   : > { %1897 = vmatprep.subr.bf16.mxu1 %v2163_v3 }
  0x7d   : > { %1947 = vmatpush3.bf16.xpose.msra.mxu0 %v2412_v16 }
  0x7e   : > { %1948 = vmatprep.subr.bf16.mxu0 %v2163_v3 }
  0x7f   : > { %1899 = vmatpush3.bf16.xpose.msra.mxu1 %v2401_v63 }
  0x80   : > { %1900 = vmatprep.subr.bf16.mxu1 %v2163_v3 }
  0x85   : > { %1950 = vmatpush3.bf16.xpose.msra.mxu0 %v2420_v37 }
  0x86   : > { %1951 = vmatprep.subr.bf16.mxu0 %v2163_v3 }
  0x87   : > { %1902 = vmatpush3.bf16.xpose.msra.mxu1 %v1901_v19 }
  0x88   : > { %1903 = vmatprep.subr.bf16.mxu1 %v2163_v3 }
  0x8d   : > { %1953 = vmatpush3.bf16.xpose.msra.mxu0 %v2428_v46 }
  0x8e   : > { %1954 = vmatprep.subr.bf16.mxu0 %v2163_v3 }
  0x8f   : > { %1905 = vmatpush3.bf16.xpose.msra.mxu1 %v1904_v41 }
  0x90   : > { %2002 = vmatprep.subr.bf16.mxu1 %v2163_v3 }
  0x94   : > { %1720 = vmatmul.mubr.f32.vlgmr.msra.gmra.mrb[0].mxu0 %v318_v43 }
  0x95   : > { %1956 = vmatpush3.bf16.xpose.msra.mxu0 %v2309_v44  ;;  %1754 = vmatprep.mubr.msk.f32.mxu0 %vm2164_vm1, %v2165_v33  ;;  %v877_v44 = vld [vmem:[%s2594_s2 + $0x8] sm:$0xff] }
  0x96   : > { %1957 = vmatprep.subr.bf16.mxu0 %v2163_v3  ;;  %1650 = vmatmul.mubr.f32.vlgmr.msra.gmra.mrb[0].mxu1 %v2422_v39 }
  0x97   : > { %1800 = vmatprep.mubr.msk.f32.mxu1 %vm2164_vm1, %v2165_v33 }
  0x9d   : > { %1959 = vmatpush3.bf16.xpose.msra.mxu0 %v2316_v56 }
  0x9e   : > { %1960 = vmatprep.subr.bf16.mxu0 %v2163_v3 }
  0xa5   : > { %1962 = vmatpush3.bf16.xpose.msra.mxu0 %v2323_v61 }
  0xa6   : > { %1963 = vmatprep.subr.bf16.mxu0 %v2163_v3 }
  0xad   : > { %1965 = vmatpush3.bf16.xpose.msra.mxu0 %v2337_v11  ;;  %v879_v11 = vld [vmem:[%s2594_s2 + $0x18] sm:$0xff] }
  0xae   : > { %1966 = vmatprep.subr.bf16.mxu0 %v2163_v3  ;;  %v890_v24 = vand.u32 4294901760, %v879_v11 }
  0xb5   : > { %1968 = vmatpush3.bf16.xpose.msra.mxu0 %v2363_v30 }
  0xb6   : > { %1969 = vmatprep.subr.bf16.mxu0 %v2163_v3 }
  0xbd   : > { %1971 = vmatpush3.bf16.xpose.msra.mxu0 %v2387_v49  ;;  %v982_v49 = vsub.f32 %v879_v11, %v890_v24 }
  0xbe   : > { %1972 = vmatprep.subr.bf16.mxu0 %v2163_v3 }
  0xc5   : > { %1974 = vmatpush3.bf16.xpose.msra.mxu0 %v2407_v10 }
  0xc6   : > { %1975 = vmatprep.subr.bf16.mxu0 %v2163_v3 }
  0xcd   : > { %1977 = vmatpush3.bf16.xpose.msra.mxu0 %v2417_v32 }
  0xce   : > { %1978 = vmatprep.subr.bf16.mxu0 %v2163_v3 }
  0xd4   : > { %1755 = vmatmul.mubr.f32.vlgmr.msra.gmra.mrb[0].mxu0 %v2422_v39 }
  0xd5   : > { %1980 = vmatpush3.bf16.xpose.msra.mxu0 %v2286_v34  ;;  %1789 = vmatprep.mubr.msk.f32.mxu0 %vm2164_vm1, %v2165_v33  ;;  %v876_v34 = vld [vmem:[%s2594_s2] sm:$0xff] }
  0xd6   : > { %1981 = vmatprep.subr.bf16.mxu0 %v2163_v3  ;;  %v881_v56 = vand.u32 4294901760, %v876_v34 }
  0xd8   : > { %v961_v61 = vsub.f32 %v876_v34, %v881_v56 }
  0xdd   : > { %1983 = vmatpush3.bf16.xpose.msra.mxu0 %v2314_v51  ;;  %v884_v51 = vand.u32 4294901760, %v877_v44 }
  0xde   : > { %1984 = vmatprep.subr.bf16.mxu0 %v2163_v3 }
  0xdf   : > { %v2504_v59 = vpack.c.bf16 %v884_v51, %v881_v56  ;;  %v968_v6 = vsub.f32 %v877_v44, %v884_v51 }
  0xe1   : > { %2004 = vmatpush3.bf16.xpose.msra.mxu1 %v2504_v59  ;;  %v969_v45 = vand.u32 4294901760, %v968_v6  ;;  %v2015_v1 = vpack.c.bf16 %v968_v6, %v961_v61 }
  0xe2   : > { %2005 = vmatprep.subr.bf16.mxu1 %v2163_v3 }
  0xe3   : > { %v970_v28 = vsub.f32 %v968_v6, %v969_v45 }
  0xe5   : > { %1986 = vmatpush3.bf16.xpose.msra.mxu0 %v2346_v15  ;;  %v887_v15 = vand.u32 4294901760, %v878_v9  ;;  %v971_v52 = vand.u32 4294901760, %v970_v28 }
  0xe6   : > { %1987 = vmatprep.subr.bf16.mxu0 %v2163_v3 }
  0xe7   : > { %v2006_v30 = vpack.c.bf16 %v890_v24, %v887_v15  ;;  %v975_v38 = vsub.f32 %v878_v9, %v887_v15 }
  0xe9   : > { %2007 = vmatpush3.bf16.xpose.msra.mxu1 %v2006_v30  ;;  %v976_v55 = vand.u32 4294901760, %v975_v38  ;;  %v2018_v2 = vpack.c.bf16 %v982_v49, %v975_v38 }
  0xea   : > { %2008 = vmatprep.subr.bf16.mxu1 %v2163_v3 }
  0xeb   : > { %v977_v58 = vsub.f32 %v975_v38, %v976_v55 }
  0xed   : > { %1989 = vmatpush3.bf16.xpose.msra.mxu0 %v2375_v40  ;;  %v962_v40 = vand.u32 4294901760, %v961_v61  ;;  %v978_v62 = vand.u32 4294901760, %v977_v58 }
  0xee   : > { %1990 = vmatprep.subr.bf16.mxu0 %v2163_v3 }
  0xef   : > { %v963_v23 = vsub.f32 %v961_v61, %v962_v40  ;;  %v2027_v7 = vpack.c.bf16 %v969_v45, %v962_v40 }
  0xf1   : > { %v964_v50 = vand.u32 4294901760, %v963_v23 }
  0xf3   : > { %v2009_v54 = vpack.c.bf16 %v971_v52, %v964_v50 }
  0xf5   : > { %1992 = vmatpush3.bf16.xpose.msra.mxu0 %v2395_v57  ;;  %v983_v57 = vand.u32 4294901760, %v982_v49 }
  0xf6   : > { %1993 = vmatprep.subr.bf16.mxu0 %v2163_v3 }
  0xf7   : > { %v984_v60 = vsub.f32 %v982_v49, %v983_v57  ;;  %v2030_v4 = vpack.c.bf16 %v983_v57, %v976_v55 }
  0xf9   : > { %v985_v63 = vand.u32 4294901760, %v984_v60 }
  0xfb   : > { %v2012_v0 = vpack.c.bf16 %v985_v63, %v978_v62 }
  0xfd   : > { %1995 = vmatpush3.bf16.xpose.msra.mxu0 %v2412_v16 }
  0xfe   : > { %1996 = vmatprep.subr.bf16.mxu0 %v2163_v3 }
 0x105   : > { %1998 = vmatpush3.bf16.xpose.msra.mxu0 %v2420_v37 }
 0x106   : > { %1999 = vmatprep.subr.bf16.mxu0 %v2163_v3 }
 0x10d   : > { %2001 = vmatpush3.bf16.xpose.msra.mxu0 %v2428_v46 }
 0x114   : > { %1790 = vmatmul.mubr.f32.vlgmr.msra.gmra.mrb[0].mxu0 %v2422_v39 }
 0x169   : > { %v473_v31 = vpop.f32.mrb[0].mxu1 }
 0x16a   : > { %v1651_v53 = vpop.f32.mrb[1].mxu1 }
 0x1e7   : > { %v872_v5 = vpop.f32.mrb[0].mxu0 }
 0x1e8   : > { %v2038_v8 = vadd.f32 %v872_v5, %v473_v31  ;;  %v1791_v10 = vpop.f32.mrb[1].mxu0 }
 0x1ea   : > { %v949_v12 = vand.u32 4294901760, %v2038_v8 }
 0x1ec   : > { %v950_v13 = vsub.f32 %v2038_v8, %v949_v12 }
 0x1ee   : > { %v951_v14 = vand.u32 4294901760, %v950_v13 }
 0x1f0   : > { %v952_v16 = vsub.f32 %v950_v13, %v951_v14 }
 0x1f2   : > { %v953_v17 = vand.u32 4294901760, %v952_v16 }
 0x1f4   : > { %1801 = vmatmul.mubr.f32.vlgmr.msra.gmra.mrb[2].mxu1 %v953_v17 }
 0x1f5   : > { %2010 = vmatpush3.bf16.xpose.msra.mxu1 %v2009_v54  ;;  %1811 = vmatprep.mubr.msk.f32.mxu1 %vm2164_vm1, %v2165_v33 }
 0x1f6   : > { %2011 = vmatprep.subr.bf16.mxu1 %v2163_v3 }
 0x1fd   : > { %2013 = vmatpush3.bf16.xpose.msra.mxu1 %v2012_v0 }
 0x1fe   : > { %2014 = vmatprep.subr.bf16.mxu1 %v2163_v3 }
 0x204   : > { %1812 = vmatmul.mubr.f32.vlgmr.msra.gmra.mrb[2].mxu1 %v949_v12 }
 0x205   : > { %2016 = vmatpush3.bf16.xpose.msra.mxu1 %v2015_v1  ;;  %1822 = vmatprep.mubr.msk.f32.mxu1 %vm2164_vm1, %v2165_v33 }
 0x206   : > { %2017 = vmatprep.subr.bf16.mxu1 %v2163_v3 }
 0x20d   : > { %2019 = vmatpush3.bf16.xpose.msra.mxu1 %v2018_v2 }
 0x20e   : > { %2020 = vmatprep.subr.bf16.mxu1 %v2163_v3 }
 0x214   : > { %1823 = vmatmul.mubr.f32.vlgmr.msra.gmra.mrb[2].mxu1 %v950_v13 }
 0x215   : > { %2022 = vmatpush3.bf16.xpose.msra.mxu1 %v2504_v59  ;;  %1833 = vmatprep.mubr.msk.f32.mxu1 %vm2164_vm1, %v2165_v33 }
 0x216   : > { %2023 = vmatprep.subr.bf16.mxu1 %v2163_v3 }
 0x21d   : > { %2025 = vmatpush3.bf16.xpose.msra.mxu1 %v2006_v30 }
 0x21e   : > { %2026 = vmatprep.subr.bf16.mxu1 %v2163_v3 }
 0x224   : > { %1834 = vmatmul.mubr.f32.vlgmr.msra.gmra.mrb[2].mxu1 %v951_v14 }
 0x225   : > { %2028 = vmatpush3.bf16.xpose.msra.mxu1 %v2027_v7  ;;  %1844 = vmatprep.mubr.msk.f32.mxu1 %vm2164_vm1, %v2165_v33 }
 0x226   : > { %2029 = vmatprep.subr.bf16.mxu1 %v2163_v3 }
 0x22d   : > { %2031 = vmatpush3.bf16.xpose.msra.mxu1 %v2030_v4 }
 0x22e   : > { %2032 = vmatprep.subr.bf16.mxu1 %v2163_v3 }
 0x234   : > { %1845 = vmatmul.mubr.f32.vlgmr.msra.gmra.mrb[2].mxu1 %v949_v12 }
 0x235   : > { %2034 = vmatpush3.bf16.xpose.msra.mxu1 %v2504_v59  ;;  %1855 = vmatprep.mubr.msk.f32.mxu1 %vm2164_vm1, %v2165_v33 }
 0x236   : > { %2035 = vmatprep.subr.bf16.mxu1 %v2163_v3 }
 0x23d   : > { %2037 = vmatpush3.bf16.xpose.msra.mxu1 %v2006_v30 }
 0x244   : > { %1856 = vmatmul.mubr.f32.vlgmr.msra.gmra.mrb[2].mxu1 %v949_v12 }
 0x317   : > { %v1361_v18 = vpop.f32.mrb[2].mxu1 }
 0x318   : > { %v1365_v19 = vmul.f32 2.0, %v1361_v18  ;;  %v1857_v20 = vpop.f32.mrb[3].mxu1 }
 0x31a   : > { %1366 = vst.msk [vmem:[%s161_s9] sm:$0xff] %vm183_vm0, %v1365_v19 }
 0x31b   : > { %2112 = shalt.err (!%p2109_p3)
}
 0x31c   : > { %s2113_s27 = scalar_lea.hbm %s2549_s19, 128  ;;  %s2117_s30 = scalar_lea.hbm %s2595_s3, 256 }
 0x31d   : > { %p2114_p4 = scmp.ne.s32.totalorder %s2549_s19, %s2113_s27  ;;  %p2118_p9 = scmp.lt.u32.totalorder %s2549_s19, %s2595_s3 }
 0x31e   : > { %p2119_p10 = scmp.lt.u32.totalorder %s2117_s30, %s2113_s27  ;;  %p2121_p12 = scmp.lt.u32.totalorder %s2113_s27, %s2549_s19 }
 0x31f   : > { %p2115_p7 = pnand %p2114_p4, %p2225_p5 }
 0x320   : > { %p2120_p11 = por %p2119_p10, %p2118_p9 }
 0x321   : > { %p2116_p8 = pneg %p2115_p7 }
 0x322   : > { %p2122_p13 = por %p2121_p12, %p2120_p11 }
 0x324   : > { %p2123_p0 = pnand %p2122_p13, %p2116_p8 }
 0x326   : > { %2126 = shalt.err (!%p2123_p0)
}
 0x327   : > { %2057 = dma.vmem_to_hbm [thread:$0]  (%p2225_p5), %s2551_s10, 128, %s2549_s19, %s1368_s20  }
 0x328 PF: > { %p2063_p1 = scmp.ge.s32.totalorder %s2161_s15, 2  ;;  %s1393_s6 = sand.u32 1, %s2149_s12  }
 0x329   : > { %s1394_s7 = scalar_lea.sflag [#allocation3], %s1393_s6 }
 0x32a   : > { %p2060_p2 = pnand %p2063_p1, %p2229_p6 }
 0x32c   : > { %2144 = dma.done.wait (!%p2060_p2), %s1394_s7, 128  }
 0x32d   : > { %2146 = vsyncadd (!%p2060_p2), %s1394_s7, 4294967168  ;;  %p13_p3 = scmp.ge.s32.totalorder %s2212_s18, 4   ;;  %s2598_s12 = smov %s2153_s13 }
 0x32e   : > { %s2599_s13 = smov %s2157_s14  ;;  %s2600_s14 = smov %s2223_s21 }
 0x32f   : > { %s2601_s15 = smov %s2212_s18  ;;  %15 = sbr.rel (!%p13_p3) target bundleno = 3 (0x3), region = 67 }
 0x336   :  { %1399 = vsyncpa [#allocation3], 1 }
 0x337   :  { %1401 = vsyncpa [#allocation3 + $0x1], 1 }

</bundles_post_ra>
